<compile_context>
chip_gen: v7x
topology: tpu7x:2x2x1
jax: 0.10.0
libtpu: 0.0.40
codegen_flags: <defaults>
</compile_context>

<pallas_src>
import jax
import jax.numpy as jnp
from jax.experimental import pallas as pl
from jax.experimental.pallas import tpu as pltpu

VMEM_LIMIT = 48 * 1024 * 1024        # leaves headroom on v7x (64 MiB physical)
BF16 = jnp.bfloat16
ACT_DTYPE = jnp.bfloat16             # inter-layer activations stored as bf16


# ----------------------------------------------------------------------------
# Kernel 1: matmul + bias (column-tiled).  ConvTranspose2d on a 1x1 input and
# the SLE 4x4 / 1x1 convolutions (flattened matmuls).  Weights bf16.
# ----------------------------------------------------------------------------
def _matmul_bias_kernel(x_ref, w_ref, b_ref, o_ref):
    x = x_ref[...].astype(w_ref.dtype)
    o_ref[...] = (
        jnp.dot(x, w_ref[...], preferred_element_type=jnp.float32) + b_ref[...]
    ).astype(o_ref.dtype)


def matmul_bias(x, w, b):
    # x: (N, K) f32, w: (K, M) bf16, b: (1, M) f32 -> (N, M) f32
    N, K = x.shape
    K2, M = w.shape
    assert K == K2
    # >=2 column tiles whenever the lane-alignment rule allows it, so the v7x
    # megacore can split even the small skip-gate matmuls across both cores.
    TC = min(M // 2, 4096) if M >= 512 else M
    assert M % TC == 0 and (TC == M or TC % 128 == 0)
    return pl.pallas_call(
        _matmul_bias_kernel,
        out_shape=jax.ShapeDtypeStruct((N, M), jnp.float32),
        grid_spec=pltpu.PrefetchScalarGridSpec(
            num_scalar_prefetch=0,
            grid=(M // TC,),
            in_specs=[
                pl.BlockSpec((N, K), lambda j: (0, 0)),
                pl.BlockSpec((K, TC), lambda j: (0, j)),
                pl.BlockSpec((1, TC), lambda j: (0, j)),
            ],
            out_specs=pl.BlockSpec((N, TC), lambda j: (0, j)),
        ),
        compiler_params=pltpu.CompilerParams(
            dimension_semantics=("parallel",), vmem_limit_bytes=VMEM_LIMIT
        ),
    )(x, w, b)


# ----------------------------------------------------------------------------
# Kernel 2: fused nearest-2x upsample + 3x3 conv (stride 1, pad 1) + BN batch
# statistics, NHWC.  Each of the 4 output phases (row/col parity) is a 2x2 conv
# on the pre-upsample grid with phase-combined weights; per phase we build a
# ((TH/2)*Ws, 4*Cin) patch and run one MXU matmul.  The 1-pixel halo is built
# once per batch element in a VMEM scratch (no HBM pad round-trip).  Per-channel
# sum / sum-of-squares of the f32 conv output are accumulated into a tiny extra
# output so the BatchNorm reduction never re-reads the conv output from HBM.
# The conv output is written width/phase-packed (N, Ho, Ws, 2*Cout).
# ----------------------------------------------------------------------------
def _upconv_kernel(x_ref, w_ref, b_ref, o_ref, stat_ref, pad_ref):
    # x_ref:   (1, Hs, Ws, Cin)  un-padded pre-upsample source (resident per n)
    # w_ref:   (4, 4*Cin, TCo)   bf16 phase weights
    # b_ref:   (1, TCo)          f32 bias
    # o_ref:   (1, TH, Ws, 2*TCo) packed output tile
    # stat_ref:(1, 1, 2, TCo)    f32 [sum, sum_sq] accumulator (resident over h)
    # pad_ref: (Hs+2, Ws+2, Cin) bf16 halo scratch
    _, TH, ws, c2t = o_ref.shape
    tco = c2t // 2
    cin = x_ref.shape[-1]
    hs = x_ref.shape[1]
    thh = TH // 2
    h = pl.program_id(2)

    @pl.when(h == 0)
    def _init():
        # Build the zero-halo source once per (co, n); zero the stat accumulator.
        pad_ref[...] = jnp.zeros_like(pad_ref)
        pad_ref[1:hs + 1, 1:ws + 1, :] = x_ref[0].astype(BF16)
        stat_ref[...] = jnp.zeros_like(stat_ref)

    row0 = pl.multiple_of(h * thh, thh)
    src = pad_ref[pl.ds(row0, thh + 2), :, :]                  # (thh+2, Ws+2, Cin)
    cols = tuple(src[:, c:c + ws, :] for c in range(3))        # 3 column offsets
    bias = b_ref[...]                                          # (1, TCo)

    def phase(pr, pc):
        taps = [cols[pc + b][pr + a:pr + a + thh] for a in (0, 1) for b in (0, 1)]
        patch = jnp.concatenate(taps, axis=-1).reshape(thh * ws, 4 * cin)
        res = jnp.dot(patch, w_ref[pr * 2 + pc],
                      preferred_element_type=jnp.float32) + bias
        return res                                             # (thh*ws, TCo) f32

    p00, p01, p10, p11 = phase(0, 0), phase(0, 1), phase(1, 0), phase(1, 1)

    # Fused BatchNorm batch statistics (from the f32 pre-cast conv outputs).
    s1 = (p00 + p01 + p10 + p11).sum(axis=0, keepdims=True)                 # (1, TCo)
    s2 = (p00 * p00 + p01 * p01 + p10 * p10 + p11 * p11).sum(axis=0, keepdims=True)
    stat_ref[0, 0] += jnp.concatenate([s1, s2], axis=0)                     # (2, TCo)

    def to3(p):
        return p.astype(o_ref.dtype).reshape(thh, ws, tco)

    row_even = jnp.concatenate([to3(p00), to3(p01)], axis=-1)  # (thh, ws, 2*TCo)
    row_odd = jnp.concatenate([to3(p10), to3(p11)], axis=-1)
    out = jnp.stack([row_even, row_odd], axis=1).reshape(TH, ws, c2t)
    o_ref[...] = out.reshape(1, TH, ws, c2t)


def upconv(x, wq, bias):
    # x: (N, Hs, Ws, Cin) -> nearest2x + conv3x3 -> (N, 2Hs, 2Ws, Cout) bf16
    # also returns per-channel (sum, sum_sq) of the f32 conv output for BN.
    N, Hs, Ws, Cin = x.shape
    _, K4, Cout = wq.shape
    assert K4 == 4 * Cin
    tco = min(Cout, 256)          # tile Cout for the big-weight layers (up4/up8)
    assert Cout % tco == 0
    n_co = Cout // tco
    Ho = 2 * Hs
    TH = min(Ho, 64)
    assert Ho % TH == 0 and TH % 2 == 0
    packed, stats = pl.pallas_call(
        _upconv_kernel,
        out_shape=(
            jax.ShapeDtypeStruct((N, Ho, Ws, 2 * Cout), ACT_DTYPE),
            jax.ShapeDtypeStruct((N, n_co, 2, tco), jnp.float32),
        ),
        grid_spec=pltpu.PrefetchScalarGridSpec(
            num_scalar_prefetch=0,
            grid=(n_co, N, Ho // TH),     # co outermost: big weights read once
            in_specs=[
                pl.BlockSpec((1, Hs, Ws, Cin), lambda co, n, h: (n, 0, 0, 0)),
                pl.BlockSpec((4, 4 * Cin, tco), lambda co, n, h: (0, 0, co)),
                pl.BlockSpec((1, tco), lambda co, n, h: (0, co)),
            ],
            out_specs=[
                pl.BlockSpec((1, TH, Ws, 2 * tco), lambda co, n, h: (n, h, 0, co)),
                pl.BlockSpec((1, 1, 2, tco), lambda co, n, h: (n, co, 0, 0)),
            ],
            scratch_shapes=[pltpu.VMEM((Hs + 2, Ws + 2, Cin), BF16)],
        ),
        compiler_params=pltpu.CompilerParams(
            # h is an accumulation axis (BN stats + halo scratch) -> arbitrary.
            dimension_semantics=("parallel", "parallel", "arbitrary"),
            vmem_limit_bytes=VMEM_LIMIT,
        ),
    )(x, wq, bias)
    # Undo the (cout-tile, col-phase, channel) lane packing.  For n_co == 1 this
    # is a pure row-major reshape; for up4/up8 a tiny transpose.
    v = packed.reshape(N, Ho, Ws, n_co, 2, tco).transpose(0, 1, 2, 4, 3, 5)
    y = v.reshape(N, Ho, 2 * Ws, Cout)
    s = jnp.sum(stats, axis=0)                  # (n_co, 2, tco)
    s1 = s[:, 0, :].reshape(Cout)
    s2 = s[:, 1, :].reshape(Cout)
    return y, (s1, s2)


# ----------------------------------------------------------------------------
# Kernel 3: plain 3x3 conv (stride 1, pad 1) + tanh for the final 32->3 layer.
# Halo is built in a VMEM scratch (no HBM pad); 9 taps packed into K = 9*Cin
# for one MXU matmul per row tile.
# TODO(synk): channel-packed lane-dense output layout (Cout=3 stores are
# currently lane-masked); fp8/int8 weights are irrelevant here (tiny weight).
# ----------------------------------------------------------------------------
def _conv3x3_tanh_kernel(x_ref, w_ref, b_ref, o_ref, pad_ref):
    _, TH, W, Cout = o_ref.shape
    cin = x_ref.shape[-1]
    H = x_ref.shape[1]
    h = pl.program_id(1)

    @pl.when(h == 0)
    def _init():
        pad_ref[...] = jnp.zeros_like(pad_ref)
        pad_ref[1:H + 1, 1:W + 1, :] = x_ref[0].astype(BF16)

    r0 = pl.multiple_of(h * TH, TH)
    src = pad_ref[pl.ds(r0, TH + 2), :, :]                     # (TH+2, W+2, Cin)
    taps = [src[dh:dh + TH, dw:dw + W, :] for dh in range(3) for dw in range(3)]
    patch = jnp.concatenate(taps, axis=-1).reshape(TH * W, 9 * cin)
    res = jnp.dot(patch, w_ref[...], preferred_element_type=jnp.float32) + b_ref[...]
    o_ref[...] = jnp.tanh(res).reshape(1, TH, W, Cout)


def conv3x3_tanh(x, w, b):
    # x: (N,H,W,Cin) bf16, w: (9*Cin, Cout) bf16, b: (1, Cout) -> (N,H,W,Cout) f32
    N, H, W, Cin = x.shape
    Cout = w.shape[-1]
    TH = min(H, 32)
    assert H % TH == 0
    return pl.pallas_call(
        _conv3x3_tanh_kernel,
        out_shape=jax.ShapeDtypeStruct((N, H, W, Cout), jnp.float32),
        grid_spec=pltpu.PrefetchScalarGridSpec(
            num_scalar_prefetch=0,
            grid=(N, H // TH),
            in_specs=[
                pl.BlockSpec((1, H, W, Cin), lambda n, h: (n, 0, 0, 0)),
                pl.BlockSpec((9 * Cin, Cout), lambda n, h: (0, 0)),
                pl.BlockSpec((1, Cout), lambda n, h: (0, 0)),
            ],
            out_specs=pl.BlockSpec((1, TH, W, Cout), lambda n, h: (n, h, 0, 0)),
            scratch_shapes=[pltpu.VMEM((H + 2, W + 2, Cin), BF16)],
        ),
        compiler_params=pltpu.CompilerParams(
            dimension_semantics=("parallel", "arbitrary"),   # h uses the scratch
            vmem_limit_bytes=VMEM_LIMIT,
        ),
    )(x, w, b)


# ----------------------------------------------------------------------------
# Kernel 4: fused BatchNorm-apply + GLU(channel) + skip-excitation gate.
# Batch statistics come pre-reduced from the conv kernels (training-mode BN).
# ----------------------------------------------------------------------------
def _bn_glu_kernel(y_ref, scale_ref, shift_ref, gate_ref, o_ref):
    C = o_ref.shape[-1]
    y = y_ref[...].astype(jnp.float32) * scale_ref[...] + shift_ref[...]
    a = y[..., :C]
    g = y[..., C:]
    o_ref[...] = ((a * jax.nn.sigmoid(g)) * gate_ref[...]).astype(o_ref.dtype)


def bn_glu(y, gamma, beta, sums=None, gate=None, eps=1e-5):
    # y: (N, H, W, 2C) -> (N, H, W, C) bf16.  Training-mode BatchNorm2d.
    N, H, W, C2 = y.shape
    C = C2 // 2
    count = N * H * W
    if sums is None:      # only used for the tiny 4x4 ConvTranspose output
        yf = y.astype(jnp.float32)
        s1 = jnp.sum(yf, axis=(0, 1, 2))
        s2 = jnp.sum(yf * yf, axis=(0, 1, 2))
    else:
        s1, s2 = sums
    m1 = s1 / count
    var = jnp.maximum(s2 / count - m1 * m1, 0.0)
    inv = gamma / jnp.sqrt(var + eps)
    scale = inv.reshape(1, C2)
    shift = (beta - m1 * inv).reshape(1, C2)
    if gate is None:
        gate = jnp.ones((N, 1, C), jnp.float32)
    TH = min(H, 64)
    assert H % TH == 0
    return pl.pallas_call(
        _bn_glu_kernel,
        out_shape=jax.ShapeDtypeStruct((N, H, W, C), ACT_DTYPE),
        grid_spec=pltpu.PrefetchScalarGridSpec(
            num_scalar_prefetch=0,
            grid=(N, H // TH),
            in_specs=[
                pl.BlockSpec((1, TH, W, C2), lambda n, h: (n, h, 0, 0)),
                pl.BlockSpec((1, C2), lambda n, h: (0, 0)),
                pl.BlockSpec((1, C2), lambda n, h: (0, 0)),
                pl.BlockSpec((1, 1, C), lambda n, h: (n, 0, 0)),
            ],
            out_specs=pl.BlockSpec((1, TH, W, C), lambda n, h: (n, h, 0, 0)),
        ),
        compiler_params=pltpu.CompilerParams(
            dimension_semantics=("parallel", "parallel"),
            vmem_limit_bytes=VMEM_LIMIT,
        ),
    )(y, scale, shift, gate)


# ----------------------------------------------------------------------------
# Module-level glue (tiny ops kept in plain JAX)
# ----------------------------------------------------------------------------
def adaptive_avg_pool_4x4(x):  # NHWC, H and W divisible by 4
    N, H, W, C = x.shape
    return x.reshape(N, 4, H // 4, 4, W // 4, C).mean(axis=(2, 4))


def upsampler_forward(x, p, gate=None):
    y, sums = upconv(x, p["wq"], p["b"])
    return bn_glu(y, p["gamma"], p["beta"], sums=sums, gate=gate)


def skip_gate(x2, p):
    # SkipLayerExcitation excitation: pool->conv4x4->LeakyReLU(0.1)->conv1x1->sigmoid
    N, _, _, C2 = x2.shape
    pooled = adaptive_avg_pool_4x4(x2.astype(jnp.float32))     # (N, 4, 4, C2)
    flat = pooled.reshape(N, 16 * C2)                          # (h, w, c) order
    h = matmul_bias(flat, p["w1"], p["b1"])
    h = jnp.where(h >= 0, h, 0.1 * h)                          # LeakyReLU(0.1)
    g = jax.nn.sigmoid(matmul_bias(h, p["w2"], p["b2"]))       # (N, C1)
    return g.reshape(N, 1, g.shape[-1])


def generator_forward(params, z):
    # Generator(use_skips=True, output_resolution=256)
    z = z.reshape(-1, 256, 1, 1)
    N = z.shape[0]
    x = z.reshape(N, 256)

    # ConvTranspose2d(256, 2048, k=4) on a 1x1 input == matmul; columns are
    # (h, w, c)-ordered so the reshape to NHWC is free.
    y = matmul_bias(x, params["ct_w"], params["ct_b"])          # (N, 4*4*2048)
    y = y.reshape(N, 4, 4, 2048)
    x_4 = bn_glu(y, params["bn0_g"], params["bn0_b"])           # (N,4,4,1024)

    x_8 = upsampler_forward(x_4, params["up4"])                 # (N,8,8,512)
    x_16 = upsampler_forward(x_8, params["up8"])                # (N,16,16,256)
    x_32 = upsampler_forward(x_16, params["up16"])              # (N,32,32,128)
    x_64 = upsampler_forward(x_32, params["up32"])              # (N,64,64,128)

    gate_128 = skip_gate(x_8, params["skip_8_128"])             # (N,1,64)
    x_128 = upsampler_forward(x_64, params["up64"], gate_128)   # (N,128,128,64)
    gate_pen = skip_gate(x_16, params["skip_16_256"])           # (N,1,32)
    x_pen = upsampler_forward(x_128, params["up128"], gate_pen)  # (N,256,256,32)

    return conv3x3_tanh(x_pen, params["conv_w"], params["conv_b"])  # (N,256,256,3)


# ----------------------------------------------------------------------------
# Parameter init (PyTorch layouts) and one-time kernel-ready preparation.
# ----------------------------------------------------------------------------
def init_params(key):
    keys = iter(jax.random.split(key, 64))

    def nrm(shape, s=0.05):
        return s * jax.random.normal(next(keys), shape, jnp.float32)

    p = {}
    p["ct_w"] = nrm((256, 2048, 4, 4))             # ConvTranspose2d: (in,out,kh,kw)
    p["ct_b"] = nrm((2048,), 0.01)
    p["bn0_g"] = jnp.ones((2048,), jnp.float32)
    p["bn0_b"] = jnp.zeros((2048,), jnp.float32)

    def upsampler_params(cin, cout):
        return {
            "w": nrm((cout * 2, cin, 3, 3)),       # Conv2d: (out,in,kh,kw)
            "b": nrm((cout * 2,), 0.01),
            "gamma": jnp.ones((cout * 2,), jnp.float32),
            "beta": jnp.zeros((cout * 2,), jnp.float32),
        }

    p["up4"] = upsampler_params(1024, 512)
    p["up8"] = upsampler_params(512, 256)
    p["up16"] = upsampler_params(256, 128)
    p["up32"] = upsampler_params(128, 128)
    p["up64"] = upsampler_params(128, 64)
    p["up128"] = upsampler_params(64, 32)

    def skip_params(c1, c2):
        return {
            "w1": nrm((c2, c2, 4, 4)),
            "b1": nrm((c2,), 0.01),
            "w2": nrm((c1, c2, 1, 1)),
            "b2": nrm((c1,), 0.01),
        }

    p["skip_8_128"] = skip_params(64, 512)
    p["skip_16_256"] = skip_params(32, 256)

    p["conv_w"] = nrm((3, 32, 3, 3))
    p["conv_b"] = nrm((3,), 0.01)
    return p


# For output row/col parity p and relative source offset t, the original 3x3
# taps that collapse onto that offset under nearest-2x upsampling.
_PHASE_TAPS = {0: ((0,), (1, 2)), 1: ((0, 1), (2,))}


def _phase_pack_weights(w_torch):
    # (Cout, Cin, 3, 3) torch conv weight -> (4, 4*Cin, Cout) bf16 phase weights
    # for the fused upsample+conv kernel (K packs the 2x2 taps, tap-major).
    # TODO(synk): int8/fp8 per-channel-scaled storage to halve weight HBM bytes.
    w = jnp.transpose(w_torch, (2, 3, 1, 0))        # (kh, kw, Cin, Cout)
    phases = []
    for pr in (0, 1):
        for pc in (0, 1):
            taps = []
            for a in (0, 1):
                for b in (0, 1):
                    acc = jnp.zeros_like(w[0, 0])
                    for dh in _PHASE_TAPS[pr][a]:
                        for dw in _PHASE_TAPS[pc][b]:
                            acc = acc + w[dh, dw]
                    taps.append(acc)                # (Cin, Cout)
            phases.append(jnp.concatenate(taps, axis=0))    # (4*Cin, Cout)
    return jnp.stack(phases, axis=0).astype(BF16)


def prepare_params(p):
    q = {}
    q["ct_w"] = (jnp.transpose(p["ct_w"], (0, 2, 3, 1))
                 .reshape(256, 16 * 2048).astype(BF16))
    q["ct_b"] = jnp.tile(p["ct_b"], 16).reshape(1, 16 * 2048)
    q["bn0_g"], q["bn0_b"] = p["bn0_g"], p["bn0_b"]

    def prep_up(u):
        cout = u["w"].shape[0]
        return {
            "wq": _phase_pack_weights(u["w"]),
            "b": u["b"].reshape(1, cout),
            "gamma": u["gamma"],
            "beta": u["beta"],
        }

    for k in ("up4", "up8", "up16", "up32", "up64", "up128"):
        q[k] = prep_up(p[k])

    def prep_skip(s):
        c2 = s["w1"].shape[0]
        c1 = s["w2"].shape[0]
        return {
            "w1": (jnp.transpose(s["w1"], (2, 3, 1, 0))      # (kh,kw,cin,cout)
                   .reshape(16 * c2, c2).astype(BF16)),
            "b1": s["b1"].reshape(1, c2),
            "w2": s["w2"].reshape(c1, c2).T.astype(BF16),
            "b2": s["b2"].reshape(1, c1),
        }

    q["skip_8_128"] = prep_skip(p["skip_8_128"])
    q["skip_16_256"] = prep_skip(p["skip_16_256"])

    q["conv_w"] = (jnp.transpose(p["conv_w"], (2, 3, 1, 0))
                   .reshape(9 * 32, 3).astype(BF16))
    q["conv_b"] = p["conv_b"].reshape(1, 3)
    return q


# ----------------------------------------------------------------------------
# Pure-XLA reference for the fused upsample+conv kernel (correctness check).
# Uses the same bf16-rounded weights / inputs so tolerances stay tight.
# ----------------------------------------------------------------------------
def _upconv_reference(x, w_oihw, b):
    xf = x.astype(BF16).astype(jnp.float32)
    wf = w_oihw.astype(BF16).astype(jnp.float32)
    u = jnp.repeat(jnp.repeat(xf, 2, axis=1), 2, axis=2)       # nearest 2x
    y = jax.lax.conv_general_dilated(
        u, jnp.transpose(wf, (2, 3, 1, 0)), window_strides=(1, 1),
        padding=((1, 1), (1, 1)), dimension_numbers=("NHWC", "HWIO", "NHWC"),
        precision=jax.lax.Precision.HIGHEST)
    return y + b.reshape(1, 1, 1, -1)


if __name__ == "__main__":
    key = jax.random.PRNGKey(0)
    pkey, zkey, tkey = jax.random.split(key, 3)

    # --- unit check: fused upsample+conv+BN-stats kernel vs. XLA reference ---
    k1, k2, k3 = jax.random.split(tkey, 3)
    xt = jax.random.normal(k1, (2, 8, 8, 16), jnp.float32)
    wt = 0.05 * jax.random.normal(k2, (512, 16, 3, 3), jnp.float32)
    bt = 0.01 * jax.random.normal(k3, (512,), jnp.float32)
    y_k, (s1_k, s2_k) = jax.jit(upconv)(xt, _phase_pack_weights(wt),
                                        bt.reshape(1, -1))
    y_r = _upconv_reference(xt, wt, bt)
    assert float(jnp.max(jnp.abs(y_k.astype(jnp.float32) - y_r))) < 0.1
    assert float(jnp.max(jnp.abs(s1_k - jnp.sum(y_r, axis=(0, 1, 2))))) < 1.0
    assert float(jnp.max(jnp.abs(s2_k - jnp.sum(y_r * y_r, axis=(0, 1, 2))))) < 4.0

    # --- full generator forward ----------------------------------------------
    raw_params = init_params(pkey)
    params = prepare_params(raw_params)        # one-time bf16 / phase packing
    z = jax.random.normal(zkey, (2, 256, 1, 1), jnp.float32)   # batch=2 latent

    fwd = jax.jit(generator_forward)
    out = jax.block_until_ready(fwd(params, z))

    assert out.shape == (2, 256, 256, 3), out.shape
    assert bool(jnp.all(jnp.isfinite(out)))
    assert bool(jnp.all(jnp.abs(out) <= 1.0))  # tanh output range
    print("KERNEL_OK")
</pallas_src>

<mosaic_0001>
module attributes {stable_mosaic.version = 11 : i64} {
  func.func @_upconv_kernel(%arg0: i32, %arg1: i32, %arg2: i32, %arg3: memref<1x8x8x16xf32, #tpu.memory_space<vmem>>, %arg4: memref<4x64x256xbf16, #tpu.memory_space<vmem>>, %arg5: memref<1x256xf32, #tpu.memory_space<vmem>>, %arg6: memref<1x16x8x512xbf16, #tpu.memory_space<vmem>>, %arg7: memref<1x1x2x256xf32, #tpu.memory_space<vmem>>, %arg8: memref<10x10x16xbf16, #tpu.memory_space<vmem>>) attributes {dimension_semantics = [#tpu.dimension_semantics<parallel>, #tpu.dimension_semantics<parallel>, #tpu.dimension_semantics<arbitrary>], iteration_bounds = array<i64: 2, 2, 1>, scalar_prefetch = 0 : i64, scratch_operands = 1 : i64, tpu.core_type = #tpu.core_type<tc>, window_params = [{transform_indices = @transform_0, window_bounds = array<i64: 1, 8, 8, 16>}, {transform_indices = @transform_1, window_bounds = array<i64: 4, 64, 256>}, {transform_indices = @transform_2, window_bounds = array<i64: 1, 256>}, {transform_indices = @transform_3, window_bounds = array<i64: 1, 16, 8, 512>}, {transform_indices = @transform_4, window_bounds = array<i64: 1, 1, 2, 256>}]} {
    %c0_i32 = arith.constant 0 : i32
    %0 = arith.cmpi eq, %arg2, %c0_i32 : i32
    %1 = arith.extui %0 : i1 to i32
    %c0_i32_0 = arith.constant 0 : i32
    %2 = arith.cmpi ne, %1, %c0_i32_0 : i32
    scf.if %2 {
      %cst_30 = arith.constant 0.000000e+00 : bf16
      %92 = vector.broadcast %cst_30 : bf16 to vector<10x10x16xbf16>
      %c0_31 = arith.constant 0 : index
      %c0_32 = arith.constant 0 : index
      %c0_33 = arith.constant 0 : index
      %93 = vector.load %arg8[%c0_31, %c0_32, %c0_33] : memref<10x10x16xbf16, #tpu.memory_space<vmem>>, vector<10x10x16xbf16>
      tpu.vector_store %arg8[%c0_31, %c0_32, %c0_33], %92 {strides = array<i32>} : memref<10x10x16xbf16, #tpu.memory_space<vmem>>, vector<10x10x16xbf16>,
      %c0_34 = arith.constant 0 : index
      %c0_35 = arith.constant 0 : index
      %c0_36 = arith.constant 0 : index
      %c0_37 = arith.constant 0 : index
      %94 = vector.load %arg3[%c0_34, %c0_35, %c0_36, %c0_37] : memref<1x8x8x16xf32, #tpu.memory_space<vmem>>, vector<1x8x8x16xf32>
      %95 = vector.shape_cast %94 : vector<1x8x8x16xf32> to vector<8x8x16xf32>
      %96 = arith.truncf %95 : vector<8x8x16xf32> to vector<8x8x16xbf16>
      %c1_38 = arith.constant 1 : index
      %c1_39 = arith.constant 1 : index
      %c0_40 = arith.constant 0 : index
      %97 = vector.load %arg8[%c1_38, %c1_39, %c0_40] : memref<10x10x16xbf16, #tpu.memory_space<vmem>>, vector<8x8x16xbf16>
      tpu.vector_store %arg8[%c1_38, %c1_39, %c0_40], %96 {strides = array<i32>} : memref<10x10x16xbf16, #tpu.memory_space<vmem>>, vector<8x8x16xbf16>,
      %cst_41 = arith.constant 0.000000e+00 : f32
      %98 = vector.broadcast %cst_41 : f32 to vector<1x1x2x256xf32>
      %c0_42 = arith.constant 0 : index
      %c0_43 = arith.constant 0 : index
      %c0_44 = arith.constant 0 : index
      %c0_45 = arith.constant 0 : index
      %99 = vector.load %arg7[%c0_42, %c0_43, %c0_44, %c0_45] : memref<1x1x2x256xf32, #tpu.memory_space<vmem>>, vector<1x1x2x256xf32>
      tpu.vector_store %arg7[%c0_42, %c0_43, %c0_44, %c0_45], %98 {strides = array<i32>} : memref<1x1x2x256xf32, #tpu.memory_space<vmem>>, vector<1x1x2x256xf32>,
    } else {
    }
    %c8_i32 = arith.constant 8 : i32
    %3 = arith.muli %arg2, %c8_i32 : i32
    %4 = tpu.assume_multiple %3, 8 : i32
    %5 = arith.index_cast %4 : i32 to index
    %c0 = arith.constant 0 : index
    %c0_1 = arith.constant 0 : index
    %6 = vector.load %arg8[%5, %c0, %c0_1] : memref<10x10x16xbf16, #tpu.memory_space<vmem>>, vector<10x10x16xbf16>
    %7 = vector.extract_strided_slice %6 {offsets = [0, 0, 0], sizes = [10, 8, 16], strides = [1, 1, 1]} : vector<10x10x16xbf16> to vector<10x8x16xbf16>
    %8 = vector.extract_strided_slice %6 {offsets = [0, 1, 0], sizes = [10, 8, 16], strides = [1, 1, 1]} : vector<10x10x16xbf16> to vector<10x8x16xbf16>
    %9 = vector.extract_strided_slice %6 {offsets = [0, 2, 0], sizes = [10, 8, 16], strides = [1, 1, 1]} : vector<10x10x16xbf16> to vector<10x8x16xbf16>
    %c0_2 = arith.constant 0 : index
    %c0_3 = arith.constant 0 : index
    %10 = vector.load %arg5[%c0_2, %c0_3] : memref<1x256xf32, #tpu.memory_space<vmem>>, vector<1x256xf32>
    %11 = vector.extract_strided_slice %7 {offsets = [0, 0, 0], sizes = [8, 8, 16], strides = [1, 1, 1]} : vector<10x8x16xbf16> to vector<8x8x16xbf16>
    %12 = vector.extract_strided_slice %8 {offsets = [0, 0, 0], sizes = [8, 8, 16], strides = [1, 1, 1]} : vector<10x8x16xbf16> to vector<8x8x16xbf16>
    %13 = vector.extract_strided_slice %7 {offsets = [1, 0, 0], sizes = [8, 8, 16], strides = [1, 1, 1]} : vector<10x8x16xbf16> to vector<8x8x16xbf16>
    %14 = vector.extract_strided_slice %8 {offsets = [1, 0, 0], sizes = [8, 8, 16], strides = [1, 1, 1]} : vector<10x8x16xbf16> to vector<8x8x16xbf16>
    %15 = tpu.concatenate %11, %12, %13, %14 in 2 : vector<8x8x16xbf16>, vector<8x8x16xbf16>, vector<8x8x16xbf16>, vector<8x8x16xbf16> -> vector<8x8x64xbf16>
    %16 = vector.shape_cast %15 : vector<8x8x64xbf16> to vector<64x64xbf16>
    %c0_4 = arith.constant 0 : index
    %c0_5 = arith.constant 0 : index
    %c0_6 = arith.constant 0 : index
    %17 = vector.load %arg4[%c0_4, %c0_5, %c0_6] : memref<4x64x256xbf16, #tpu.memory_space<vmem>>, vector<1x64x256xbf16>
    %18 = vector.shape_cast %17 : vector<1x64x256xbf16> to vector<64x256xbf16>
    %cst = arith.constant dense<0.000000e+00> : vector<64x256xf32>
    %19 = tpu.matmul %16, %18, %cst {dimension_numbers = #tpu.dot_dimension_numbers<[1], [0], [0], [1], [0, 0, 1, 1], [], []>} : vector<64x64xbf16>, vector<64x256xbf16>, vector<64x256xf32> -> vector<64x256xf32>
    %20 = vector.broadcast %10 : vector<1x256xf32> to vector<64x256xf32>
    %21 = arith.addf %19, %20 : vector<64x256xf32>
    %22 = vector.extract_strided_slice %8 {offsets = [0, 0, 0], sizes = [8, 8, 16], strides = [1, 1, 1]} : vector<10x8x16xbf16> to vector<8x8x16xbf16>
    %23 = vector.extract_strided_slice %9 {offsets = [0, 0, 0], sizes = [8, 8, 16], strides = [1, 1, 1]} : vector<10x8x16xbf16> to vector<8x8x16xbf16>
    %24 = vector.extract_strided_slice %8 {offsets = [1, 0, 0], sizes = [8, 8, 16], strides = [1, 1, 1]} : vector<10x8x16xbf16> to vector<8x8x16xbf16>
    %25 = vector.extract_strided_slice %9 {offsets = [1, 0, 0], sizes = [8, 8, 16], strides = [1, 1, 1]} : vector<10x8x16xbf16> to vector<8x8x16xbf16>
    %26 = tpu.concatenate %22, %23, %24, %25 in 2 : vector<8x8x16xbf16>, vector<8x8x16xbf16>, vector<8x8x16xbf16>, vector<8x8x16xbf16> -> vector<8x8x64xbf16>
    %27 = vector.shape_cast %26 : vector<8x8x64xbf16> to vector<64x64xbf16>
    %c1 = arith.constant 1 : index
    %c0_7 = arith.constant 0 : index
    %c0_8 = arith.constant 0 : index
    %28 = vector.load %arg4[%c1, %c0_7, %c0_8] : memref<4x64x256xbf16, #tpu.memory_space<vmem>>, vector<1x64x256xbf16>
    %29 = vector.shape_cast %28 : vector<1x64x256xbf16> to vector<64x256xbf16>
    %cst_9 = arith.constant dense<0.000000e+00> : vector<64x256xf32>
    %30 = tpu.matmul %27, %29, %cst_9 {dimension_numbers = #tpu.dot_dimension_numbers<[1], [0], [0], [1], [0, 0, 1, 1], [], []>} : vector<64x64xbf16>, vector<64x256xbf16>, vector<64x256xf32> -> vector<64x256xf32>
    %31 = vector.broadcast %10 : vector<1x256xf32> to vector<64x256xf32>
    %32 = arith.addf %30, %31 : vector<64x256xf32>
    %33 = vector.extract_strided_slice %7 {offsets = [1, 0, 0], sizes = [8, 8, 16], strides = [1, 1, 1]} : vector<10x8x16xbf16> to vector<8x8x16xbf16>
    %34 = vector.extract_strided_slice %8 {offsets = [1, 0, 0], sizes = [8, 8, 16], strides = [1, 1, 1]} : vector<10x8x16xbf16> to vector<8x8x16xbf16>
    %35 = vector.extract_strided_slice %7 {offsets = [2, 0, 0], sizes = [8, 8, 16], strides = [1, 1, 1]} : vector<10x8x16xbf16> to vector<8x8x16xbf16>
    %36 = vector.extract_strided_slice %8 {offsets = [2, 0, 0], sizes = [8, 8, 16], strides = [1, 1, 1]} : vector<10x8x16xbf16> to vector<8x8x16xbf16>
    %37 = tpu.concatenate %33, %34, %35, %36 in 2 : vector<8x8x16xbf16>, vector<8x8x16xbf16>, vector<8x8x16xbf16>, vector<8x8x16xbf16> -> vector<8x8x64xbf16>
    %38 = vector.shape_cast %37 : vector<8x8x64xbf16> to vector<64x64xbf16>
    %c2 = arith.constant 2 : index
    %c0_10 = arith.constant 0 : index
    %c0_11 = arith.constant 0 : index
    %39 = vector.load %arg4[%c2, %c0_10, %c0_11] : memref<4x64x256xbf16, #tpu.memory_space<vmem>>, vector<1x64x256xbf16>
    %40 = vector.shape_cast %39 : vector<1x64x256xbf16> to vector<64x256xbf16>
    %cst_12 = arith.constant dense<0.000000e+00> : vector<64x256xf32>
    %41 = tpu.matmul %38, %40, %cst_12 {dimension_numbers = #tpu.dot_dimension_numbers<[1], [0], [0], [1], [0, 0, 1, 1], [], []>} : vector<64x64xbf16>, vector<64x256xbf16>, vector<64x256xf32> -> vector<64x256xf32>
    %42 = vector.broadcast %10 : vector<1x256xf32> to vector<64x256xf32>
    %43 = arith.addf %41, %42 : vector<64x256xf32>
    %44 = vector.extract_strided_slice %8 {offsets = [1, 0, 0], sizes = [8, 8, 16], strides = [1, 1, 1]} : vector<10x8x16xbf16> to vector<8x8x16xbf16>
    %45 = vector.extract_strided_slice %9 {offsets = [1, 0, 0], sizes = [8, 8, 16], strides = [1, 1, 1]} : vector<10x8x16xbf16> to vector<8x8x16xbf16>
    %46 = vector.extract_strided_slice %8 {offsets = [2, 0, 0], sizes = [8, 8, 16], strides = [1, 1, 1]} : vector<10x8x16xbf16> to vector<8x8x16xbf16>
    %47 = vector.extract_strided_slice %9 {offsets = [2, 0, 0], sizes = [8, 8, 16], strides = [1, 1, 1]} : vector<10x8x16xbf16> to vector<8x8x16xbf16>
    %48 = tpu.concatenate %44, %45, %46, %47 in 2 : vector<8x8x16xbf16>, vector<8x8x16xbf16>, vector<8x8x16xbf16>, vector<8x8x16xbf16> -> vector<8x8x64xbf16>
    %49 = vector.shape_cast %48 : vector<8x8x64xbf16> to vector<64x64xbf16>
    %c3 = arith.constant 3 : index
    %c0_13 = arith.constant 0 : index
    %c0_14 = arith.constant 0 : index
    %50 = vector.load %arg4[%c3, %c0_13, %c0_14] : memref<4x64x256xbf16, #tpu.memory_space<vmem>>, vector<1x64x256xbf16>
    %51 = vector.shape_cast %50 : vector<1x64x256xbf16> to vector<64x256xbf16>
    %cst_15 = arith.constant dense<0.000000e+00> : vector<64x256xf32>
    %52 = tpu.matmul %49, %51, %cst_15 {dimension_numbers = #tpu.dot_dimension_numbers<[1], [0], [0], [1], [0, 0, 1, 1], [], []>} : vector<64x64xbf16>, vector<64x256xbf16>, vector<64x256xf32> -> vector<64x256xf32>
    %53 = vector.broadcast %10 : vector<1x256xf32> to vector<64x256xf32>
    %54 = arith.addf %52, %53 : vector<64x256xf32>
    %55 = arith.addf %21, %32 : vector<64x256xf32>
    %56 = arith.addf %55, %43 : vector<64x256xf32>
    %57 = arith.addf %56, %54 : vector<64x256xf32>
    %cst_16 = arith.constant dense<0.000000e+00> : vector<256xf32>
    %58 = vector.multi_reduction <add>, %57, %cst_16 [0] : vector<64x256xf32> to vector<256xf32>
    %59 = vector.shape_cast %58 : vector<256xf32> to vector<1x256xf32>
    %60 = arith.mulf %21, %21 : vector<64x256xf32>
    %61 = arith.mulf %32, %32 : vector<64x256xf32>
    %62 = arith.addf %60, %61 : vector<64x256xf32>
    %63 = arith.mulf %43, %43 : vector<64x256xf32>
    %64 = arith.addf %62, %63 : vector<64x256xf32>
    %65 = arith.mulf %54, %54 : vector<64x256xf32>
    %66 = arith.addf %64, %65 : vector<64x256xf32>
    %cst_17 = arith.constant dense<0.000000e+00> : vector<256xf32>
    %67 = vector.multi_reduction <add>, %66, %cst_17 [0] : vector<64x256xf32> to vector<256xf32>
    %68 = vector.shape_cast %67 : vector<256xf32> to vector<1x256xf32>
    %c0_18 = arith.constant 0 : index
    %c0_19 = arith.constant 0 : index
    %c0_20 = arith.constant 0 : index
    %c0_21 = arith.constant 0 : index
    %69 = vector.load %arg7[%c0_18, %c0_19, %c0_20, %c0_21] : memref<1x1x2x256xf32, #tpu.memory_space<vmem>>, vector<1x1x2x256xf32>
    %70 = vector.shape_cast %69 : vector<1x1x2x256xf32> to vector<2x256xf32>
    %71 = tpu.concatenate %59, %68 in 0 : vector<1x256xf32>, vector<1x256xf32> -> vector<2x256xf32>
    %72 = arith.addf %70, %71 : vector<2x256xf32>
    %c0_22 = arith.constant 0 : index
    %c0_23 = arith.constant 0 : index
    %c0_24 = arith.constant 0 : index
    %c0_25 = arith.constant 0 : index
    %73 = vector.load %arg7[%c0_22, %c0_23, %c0_24, %c0_25] : memref<1x1x2x256xf32, #tpu.memory_space<vmem>>, vector<1x1x2x256xf32>
    %74 = vector.shape_cast %73 : vector<1x1x2x256xf32> to vector<2x256xf32>
    %75 = vector.shape_cast %72 : vector<2x256xf32> to vector<1x1x2x256xf32>
    tpu.vector_store %arg7[%c0_22, %c0_23, %c0_24, %c0_25], %75 {strides = array<i32>} : memref<1x1x2x256xf32, #tpu.memory_space<vmem>>, vector<1x1x2x256xf32>,
    %76 = arith.truncf %21 : vector<64x256xf32> to vector<64x256xbf16>
    %77 = vector.shape_cast %76 : vector<64x256xbf16> to vector<8x8x256xbf16>
    %78 = arith.truncf %32 : vector<64x256xf32> to vector<64x256xbf16>
    %79 = vector.shape_cast %78 : vector<64x256xbf16> to vector<8x8x256xbf16>
    %80 = tpu.concatenate %77, %79 in 2 : vector<8x8x256xbf16>, vector<8x8x256xbf16> -> vector<8x8x512xbf16>
    %81 = arith.truncf %43 : vector<64x256xf32> to vector<64x256xbf16>
    %82 = vector.shape_cast %81 : vector<64x256xbf16> to vector<8x8x256xbf16>
    %83 = arith.truncf %54 : vector<64x256xf32> to vector<64x256xbf16>
    %84 = vector.shape_cast %83 : vector<64x256xbf16> to vector<8x8x256xbf16>
    %85 = tpu.concatenate %82, %84 in 2 : vector<8x8x256xbf16>, vector<8x8x256xbf16> -> vector<8x8x512xbf16>
    %86 = vector.shape_cast %80 : vector<8x8x512xbf16> to vector<8x1x8x512xbf16>
    %87 = vector.shape_cast %85 : vector<8x8x512xbf16> to vector<8x1x8x512xbf16>
    %88 = tpu.concatenate %86, %87 in 1 : vector<8x1x8x512xbf16>, vector<8x1x8x512xbf16> -> vector<8x2x8x512xbf16>
    %89 = vector.shape_cast %88 : vector<8x2x8x512xbf16> to vector<16x8x512xbf16>
    %90 = vector.shape_cast %89 : vector<16x8x512xbf16> to vector<1x16x8x512xbf16>
    %c0_26 = arith.constant 0 : index
    %c0_27 = arith.constant 0 : index
    %c0_28 = arith.constant 0 : index
    %c0_29 = arith.constant 0 : index
    %91 = vector.load %arg6[%c0_26, %c0_27, %c0_28, %c0_29] : memref<1x16x8x512xbf16, #tpu.memory_space<vmem>>, vector<1x16x8x512xbf16>
    tpu.vector_store %arg6[%c0_26, %c0_27, %c0_28, %c0_29], %90 {strides = array<i32>} : memref<1x16x8x512xbf16, #tpu.memory_space<vmem>>, vector<1x16x8x512xbf16>,
    return
  }
  func.func @transform_0(%arg0: i32, %arg1: i32, %arg2: i32) -> (i32, i32, i32, i32) {
    %c0_i32 = arith.constant 0 : i32
    %c0_i32_0 = arith.constant 0 : i32
    %c0_i32_1 = arith.constant 0 : i32
    %c0_i32_2 = arith.constant 0 : i32
    return %arg1, %c0_i32, %c0_i32_0, %c0_i32_1 : i32, i32, i32, i32
  }
  func.func @transform_1(%arg0: i32, %arg1: i32, %arg2: i32) -> (i32, i32, i32) {
    %c0_i32 = arith.constant 0 : i32
    %c0_i32_0 = arith.constant 0 : i32
    %c0_i32_1 = arith.constant 0 : i32
    return %c0_i32, %c0_i32_0, %arg0 : i32, i32, i32
  }
  func.func @transform_2(%arg0: i32, %arg1: i32, %arg2: i32) -> (i32, i32) {
    %c0_i32 = arith.constant 0 : i32
    %c0_i32_0 = arith.constant 0 : i32
    return %c0_i32, %arg0 : i32, i32
  }
  func.func @transform_3(%arg0: i32, %arg1: i32, %arg2: i32) -> (i32, i32, i32, i32) {
    %c0_i32 = arith.constant 0 : i32
    %c0_i32_0 = arith.constant 0 : i32
    return %arg1, %arg2, %c0_i32, %arg0 : i32, i32, i32, i32
  }
  func.func @transform_4(%arg0: i32, %arg1: i32, %arg2: i32) -> (i32, i32, i32, i32) {
    %c0_i32 = arith.constant 0 : i32
    %c0_i32_0 = arith.constant 0 : i32
    %c0_i32_1 = arith.constant 0 : i32
    return %arg1, %arg0, %c0_i32, %c0_i32_0 : i32, i32, i32, i32
  }
}

</mosaic_0001>

<bundles_post_ra>
// kernel: upconv.1
= control target key start
LH: loop header
LB: loop body
LE: loop exit
PB: predicated region body
PF: predicated region fallthrough
CT: control target
= control target key end

     0   :  { %s3986_s0 = inlined_call_operand.hbm [shape: f32[2,8,8,16], index: 0, kind: input, shape index: {}]   ;;  %s3987_s1 = inlined_call_operand.hbm [shape: bf16[4,64,512], index: 1, kind: input, shape index: {}]   ;;  %s3988_s2 = inlined_call_operand.vmem [shape: f32[1,512], index: 2, kind: input, shape index: {}]   ;;  %s3989_s3 = inlined_call_operand.vmem [shape: bf16[2,16,8,1024], index: 3, kind: output, shape index: {0}]   ;;  %s3990_s4 = inlined_call_operand.vmem [shape: f32[2,2,2,256], index: 4, kind: output, shape index: {1}]  }
   0x1   :  { %4000 = sst [smem:[#allocation14_spill]] %s3986_s0 }
   0x2   :  { %4001 = sst [smem:[#allocation15_spill]] %s3989_s3 }
   0x3   :  { %10 = vsyncpa [#allocation4], 0 }
   0x4   :  { %12 = vsyncpa [#allocation4 + $0x1], 0 }
   0x5   :  { %13 = vsyncpa [#allocation6], 0 }
   0x6   :  { %15 = vsyncpa [#allocation6 + $0x1], 0  ;;  %s2961_s15 = smov 0   ;;  %s2963_s16 = smov 0  }
   0x7   :  { %s2965_s17 = smov 0   ;;  %s2967_s18 = smov 0  }
   0x8   :  { %s2969_s19 = smov 0   ;;  %s2971_s20 = smov 0  }
   0x9   :  { %s2973_s21 = smov 0   ;;  %s2975_s22 = smov 0  }
   0xa   :  { %s2977_s23 = smov 0   ;;  %s2979_s24 = smov 0  }
   0xb   :  { %s2981_s25 = smov 0   ;;  %s2983_s26 = smov 0  }
   0xc   :  { %s2985_s27 = smov 0  }
   0xd LB: > { %4002 = sst [smem:[#allocation10_spill]] %s2915_s25  ;;  %s2330_s28 = sadd.s32 4294967295, %s2923_s27   ;;  %s2923_s27 = sphi %s2985_s27, %s21_s27   ;;  %s2919_s26 = sphi %s2983_s26, %s4046_s26   ;;  %s2915_s25 = sphi %s2981_s25, %s4033_s25   ;;  %s2911_s24 = sphi %s2979_s24, %s4045_s24   ;;  %s2907_s23 = sphi %s2977_s23, %s4044_s23   ;;  %s2903_s22 = sphi %s2975_s22, %s4043_s22   ;;  %s2899_s21 = sphi %s2973_s21, %s4042_s21   ;;  %s2895_s20 = sphi %s2971_s20, %s4041_s20   ;;  %s2891_s19 = sphi %s2969_s19, %s4040_s19   ;;  %s2887_s18 = sphi %s2967_s18, %s4039_s18   ;;  %s2883_s17 = sphi %s2965_s17, %s4038_s17   ;;  %s2879_s16 = sphi %s2963_s16, %s4037_s16   ;;  %s2875_s15 = sphi %s2961_s15, %s4036_s15  }
   0xe   : > { %s36_s29 = sadd.s32 1, %s2915_s25  ;;  %s40_s30 = sadd.s32 1, %s2919_s26 }
   0xf   : > { %p38_p0 = scmp.ge.s32.totalorder %s36_s29, 2  ;;  %s47_s5 = sadd.s32 1, %s2903_s22 }
  0x10   : > { %p54_p1 = scmp.ne.s32.totalorder %s2903_s22, %s2899_s21  ;;  %p3995_p2 = scmp.eq.s32.totalorder %s2923_s27, 0 }
  0x11   : > { %s4048_s29 = smov (%p38_p0, %s36_s29), 0  ;;  %s4050_s30 = smov (!%p38_p0, %s40_s30), %s2919_s26 }
  0x12   : > { %4003 = sst [smem:[#allocation11_spill]] %s4048_s29  ;;  %s44_s6 = ssub.s32 %s2915_s25, %s4048_s29 }
  0x13   : > { %p42_p3 = scmp.ge.s32.totalorder %s4050_s30, 2  ;;  %p45_p4 = scmp.eq.s32.totalorder %s44_s6, 0 }
  0x14   : > { %p3038_p5 = por %p3995_p2, %p54_p1  ;;  %p60_p6 = scmp.ne.s32.totalorder %s2899_s21, %s2895_s20 }
  0x15   : > { %s4052_s30 = smov (%p42_p3, %s4050_s30), 0  ;;  %p3048_p7 = scmp.eq.s32.totalorder %s2330_s28, 0 }
  0x16   : > { %4005 = sst [smem:[#allocation12_spill]] %s4052_s30  ;;  %s3054_s10 = ssub.s32 %s2919_s26, %s4052_s30 }
  0x17   : > { %s3046_s8 = scalar_select %p45_p4, %s2903_s22, %s47_s5  }
  0x18   : > { %s126_s11 = sor.u32 %s3054_s10, %s44_s6  ;;  %p3060_p9 = por %p3048_p7, %p60_p6 }
  0x19   : > { %4006 = sst [smem:[#allocation13_spill]] %s3046_s8  ;;  %p127_p10 = scmp.eq.s32.totalorder %s126_s11, 0 }
  0x1a   : > { %s4008_s12 = scalar_select %p3060_p9, 1, 0 }
  0x1b   : > { %s129_s13 = sadd.s32 1, %s2879_s16  ;;  %p139_p11 = scmp.ne.s32.totalorder %s2879_s16, %s2875_s15 }
  0x1c   : > { %s3068_s14 = scalar_select %p127_p10, %s2879_s16, %s129_s13  }
  0x1d   : > { %p140_p12 = scmp.eq.s32.totalorder %s2330_s28, 3  ;;  %p3994_p13 = scmp.lt.s32.totalorder %s2923_s27, 4 }
  0x1e   : > { %s194_s20 = sand.u32 1, %s2903_s22   ;;  %s2519_s29 = sshll.u32 %s2915_s25, 10 }
  0x1f   : > { %p3072_p0 = por %p140_p12, %p139_p11  ;;  %s2334_s30 = sshll.u32 %s194_s20, 6 }
  0x20   : > { %s4010_s0 = sld [smem:[#allocation14_spill]]  ;;  %s198_s11 = scalar_lea.vmem [#allocation3], %s2334_s30 }
  0x21   : > { %s4009_s5 = scalar_select %p3072_p0, 1, 0 }
  0x22   : > { %s205_s13 = sshll.u32 %s198_s11, 4  ;;  %p3086_p1 = pnand %p3994_p13, %p3038_p5  ;;  %s3090_s13 = int_to_ptr.vmem [resolvable:$true] %s205_s13 }
  0x23   : > { %s3092_s25 = scalar_lea.sflag [#allocation4], %s194_s20 }
  0x24   : > { %p2755_p4 = pneg %p3086_p1 }
  0x26   : > { %s3080_s3 = scalar_lea.hbm %s4010_s0, %s2519_s29  ;;  %s2758_s8 = scalar_lea.hbm %s4010_s0, 2048 }
  0x27   : > { %s2753_s29 = scalar_lea.hbm %s3080_s3, 1024  ;;  %p2759_p5 = scmp.lt.u32.totalorder %s3080_s3, %s4010_s0 }
  0x28   : > { %p2754_p3 = scmp.ne.s32.totalorder %s3080_s3, %s2753_s29  ;;  %p2760_p11 = scmp.lt.u32.totalorder %s2758_s8, %s2753_s29 }
  0x29   : > { %p2762_p13 = scmp.lt.u32.totalorder %s2753_s29, %s3080_s3 }
  0x2a   : > { %p2756_p6 = pnand %p2755_p4, %p2754_p3  ;;  %p2761_p12 = por %p2760_p11, %p2759_p5 }
  0x2c   : > { %p2757_p10 = pneg %p2756_p6  ;;  %p2763_p2 = por %p2762_p13, %p2761_p12 }
  0x2e   : > { %p2764_p8 = pnand %p2763_p2, %p2757_p10 }
  0x30   : > { %2767 = shalt.err (!%p2764_p8)
}
  0x31   : > { %s2768_s20 = scalar_lea.vmem %s3090_s13, 1024  ;;  %s2925_s30 = smov [#allocation3]  }
  0x32   : > { %p2769_p3 = scmp.ne.s32.totalorder %s3090_s13, %s2768_s20  ;;  %s2773_s7 = sshll.u32 %s2925_s30, 4  ;;  %s2774_s7 = int_to_ptr.vmem [resolvable:$false] %s2773_s7 }
  0x33   : > { %s2775_s6 = scalar_lea.vmem %s2774_s7, 2048  ;;  %p2776_p9 = scmp.lt.s32.totalorder %s3090_s13, %s2774_s7 }
  0x34   : > { %p2771_p6 = pnand %p2769_p3, %p2755_p4  ;;  %p2777_p5 = scmp.lt.s32.totalorder %s2775_s6, %s2768_s20 }
  0x36   : > { %p2772_p0 = pneg %p2771_p6  ;;  %p2778_p11 = por %p2777_p5, %p2776_p9 }
  0x38   : > { %p2779_p13 = pnand %p2778_p11, %p2772_p0 }
  0x3a   : > { %2782 = shalt.err (!%p2779_p13)
}
  0x3b   : > { %s3997_s29 = smov 128   ;;  %s3998_s8 = smov 8  }
  0x3c   : > { %2568 = dma.hbm_to_vmem [thread:$0]  (!%p3086_p1), %s3080_s3, 1024, %s3090_s13, %s3092_s25, %s3997_s29, %s3997_s29, %s3998_s8  }
  0x3d   : > { %p2340_p2 = scmp.ge.s32.totalorder %s2923_s27, 1  ;;  %p242_p8 = scmp.lt.s32.totalorder %s2923_s27, 5 }
  0x3e   : > { %s73_s20 = sadd.s32 1, %s2891_s19  ;;  %p4013_p0 = scmp.eq.s32.totalorder %s3054_s10, 0 }
  0x3f   : > { %p3125_p9 = pnand %p2340_p2, %p242_p8  ;;  %p80_p4 = scmp.ne.s32.totalorder %s2891_s19, %s2887_s18 }
  0x40   : > { %s3133_s30 = scalar_select %p4013_p0, %s2891_s19, %s73_s20  }
  0x41   : > { %p86_p10 = scmp.ne.s32.totalorder %s2887_s18, %s2883_s17  ;;  %s215_s7 = sand.u32 1, %s2891_s19  }
  0x42   : > { %s2520_s6 = sshll.u32 %s2919_s26, 7  ;;  %p4014_p12 = scmp.eq.s32.totalorder %s2923_s27, 0 }
  0x43   : > { %p3145_p6 = por %p86_p10, %p3048_p7  ;;  %s2337_s25 = sshll.u32 %s215_s7, 8 }
  0x44   : > { %p82_p3 = por %p80_p4, %p4014_p12  ;;  %s3152_s29 = scalar_lea.hbm %s3987_s1, %s2520_s6 }
  0x45   : > { %s4015_s3 = scalar_select %p3145_p6, 1, 0 }
  0x46   : > { %s219_s17 = scalar_lea.vmem [#allocation5], %s2337_s25  ;;  %p4016_p1 = scmp.lt.s32.totalorder %s2923_s27, 4 }
  0x47   : > { %s226_s10 = sshll.u32 %s219_s17, 4  ;;  %s3162_s9 = scalar_lea.sflag [#allocation6], %s215_s7  ;;  %s3160_s10 = int_to_ptr.vmem [resolvable:$true] %s226_s10 }
  0x48   : > { %p3156_p5 = pnand %p4016_p1, %p82_p3  ;;  %s2783_s13 = scalar_lea.hbm %s3152_s29, 4096 }
  0x49   : > { %p2784_p7 = scmp.ne.s32.totalorder %s3152_s29, %s2783_s13  ;;  %s2788_s28 = scalar_lea.hbm %s3987_s1, 8192 }
  0x4a   : > { %p2785_p11 = pneg %p3156_p5  ;;  %p2789_p8 = scmp.lt.u32.totalorder %s3152_s29, %s3987_s1 }
  0x4b   : > { %p2790_p0 = scmp.lt.u32.totalorder %s2788_s28, %s2783_s13  ;;  %p2792_p10 = scmp.lt.u32.totalorder %s2783_s13, %s3152_s29 }
  0x4c   : > { %p2786_p13 = pnand %p2785_p11, %p2784_p7 }
  0x4d   : > { %p2791_p4 = por %p2790_p0, %p2789_p8 }
  0x4e   : > { %p2787_p2 = pneg %p2786_p13 }
  0x4f   : > { %p2793_p12 = por %p2792_p10, %p2791_p4 }
  0x51   : > { %p2794_p3 = pnand %p2793_p12, %p2787_p2 }
  0x53   : > { %2797 = shalt.err (!%p2794_p3)
}
  0x54   : > { %s2798_s7 = scalar_lea.vmem %s3160_s10, 4096  ;;  %s2928_s6 = smov [#allocation5]  }
  0x55   : > { %p2799_p1 = scmp.ne.s32.totalorder %s3160_s10, %s2798_s7  ;;  %s2803_s25 = sshll.u32 %s2928_s6, 4  ;;  %s2804_s25 = int_to_ptr.vmem [resolvable:$false] %s2803_s25 }
  0x56   : > { %s2805_s8 = scalar_lea.vmem %s2804_s25, 8192  ;;  %p2806_p6 = scmp.lt.s32.totalorder %s3160_s10, %s2804_s25 }
  0x57   : > { %p2801_p7 = pnand %p2799_p1, %p2785_p11  ;;  %p2807_p8 = scmp.lt.s32.totalorder %s2805_s8, %s2798_s7 }
  0x59   : > { %p2802_p13 = pneg %p2801_p7  ;;  %p2808_p0 = por %p2807_p8, %p2806_p6 }
  0x5b   : > { %p2809_p4 = pnand %p2808_p0, %p2802_p13 }
  0x5d   : > { %2812 = shalt.err (!%p2809_p4)
}
  0x5e   : > { %s2929_s13 = smov 256   ;;  %s4018_s28 = smov 8  }
  0x5f   : > { %s4019_s17 = smov 128   ;;  %246 = sbr.rel (%p3125_p9) target bundleno = 603 (0x25b), region = 32 }
  0x60   : > { %2571 = dma.hbm_to_vmem [thread:$0]  (!%p3156_p5), %s3152_s29, 4096, %s3160_s10, %s3162_s9, %s2929_s13, %s4019_s17, %s4018_s28  }
  0x61   : > { %s248_s6 = sand.u32 (!%p3125_p9), 1, %s2899_s21   ;;  %p4020_p6 = scmp.ne.s32.totalorder (!%p3125_p9), %s4008_s12, 0 }
  0x62   : > { %s2341_s25 = sshll.u32 (!%p3125_p9), %s248_s6, 6  ;;  %s249_s7 = scalar_lea.sflag (!%p3125_p9), [#allocation4], %s248_s6 }
  0x63   : > { %s3195_s8 = scalar_lea.vmem (!%p3125_p9), [#allocation3], %s2341_s25 }
  0x66   : > { %2866 = dma.done.wait (%p4020_p6), %s249_s7, 1024  }
  0x67   : > { %2868 = vsyncadd (%p4020_p6), %s249_s7, 4294966272  ;;  %s257_s20 = sand.u32 1, %s2887_s18   ;;  %p4021_p9 = scmp.ne.s32.totalorder %s4015_s3, 0 }
  0x68   : > { %s2342_s0 = sshll.u32 %s257_s20, 8  ;;  %s258_s29 = scalar_lea.sflag [#allocation6], %s257_s20 }
  0x69   : > { %s3202_s10 = scalar_lea.vmem [#allocation5], %s2342_s0 }
  0x6a   : > { %2870 = dma.done.wait (%p4021_p9), %s258_s29, 4096  }
  0x6b   : > { %2872 = vsyncadd (%p4021_p9), %s258_s29, 4294963200  ;;  %vm325_vm0 = vcmask 125952   ;;  %vm327_vm1 = vcmask 122880   ;;  %v2930_v0 = vmov 0   ;;  %v347_v1 = vld [vmem:[%s3195_s8] sm:$0xff]  ;;  %v349_v2 = vld [vmem:[%s3195_s8 + $0x10] sm:$0xff] }
  0x6c   : > { %326 = vst.msk [vmem:[#allocation2] sm:$0xf] %vm325_vm0, %v2930_v0  ;;  %329 = vst.msk [vmem:[#allocation2 + $0x8] sm:$0xf] %vm325_vm0, %v2930_v0  ;;  %895 = vmatprep.mubr.bf16.mxu0 %v2930_v0  ;;  %1244 = vmatprep.mubr.bf16.mxu1 %v2930_v0  ;;  %v348_v3 = vld [vmem:[%s3195_s8 + $0x8] sm:$0xff]  ;;  %v2521_v6 = vpack.c.bf16 %v347_v1, %v347_v1  ;;  %v2523_v7 = vpack.c.bf16 %v349_v2, %v349_v2  ;;  %v350_v23 = vld [vmem:[%s3195_s8 + $0x18] sm:$0xff] }
  0x6d   : > { %328 = vst.msk [vmem:[#allocation2 + $0x4] sm:$0x1] %vm327_vm1, %v2930_v0  ;;  %330 = vst.msk [vmem:[#allocation2 + $0xc] sm:$0x1] %vm327_vm1, %v2930_v0  ;;  %vm469_vm2 = vsmask.f32 7938  ;;  %v2522_v8 = vpack.c.bf16 %v348_v3, %v348_v3  ;;  %v2524_v30 = vpack.c.bf16 %v350_v23, %v350_v23 }
  0x6e   : > { %331 = vst.msk [vmem:[#allocation2 + $0x10] sm:$0xf] %vm325_vm0, %v2930_v0  ;;  %333 = vst.msk [vmem:[#allocation2 + $0x18] sm:$0xf] %vm325_vm0, %v2930_v0  ;;  %vm475_vm3 = vsmask.f32 256 }
  0x6f   : > { %332 = vst.msk [vmem:[#allocation2 + $0x14] sm:$0x1] %vm327_vm1, %v2930_v0  ;;  %334 = vst.msk [vmem:[#allocation2 + $0x1c] sm:$0x1] %vm327_vm1, %v2930_v0  ;;  %v388_v10 = vshrl.u32 %v2521_v6, 16  ;;  %v391_v11 = vshll.u32 %v2521_v6, 16 }
  0x70   : > { %335 = vst.msk [vmem:[#allocation2 + $0x20] sm:$0xf] %vm325_vm0, %v2930_v0  ;;  %337 = vst.msk [vmem:[#allocation2 + $0x28] sm:$0xf] %vm325_vm0, %v2930_v0  ;;  %v404_v12 = vshrl.u32 %v2523_v7, 16  ;;  %v407_v13 = vshll.u32 %v2523_v7, 16 }
  0x71   : > { %336 = vst.msk [vmem:[#allocation2 + $0x24] sm:$0x1] %vm327_vm1, %v2930_v0  ;;  %338 = vst.msk [vmem:[#allocation2 + $0x2c] sm:$0x1] %vm327_vm1, %v2930_v0  ;;  %v396_v18 = vshrl.u32 %v2522_v8, 16  ;;  %v399_v19 = vshll.u32 %v2522_v8, 16 }
  0x72   : > { %339 = vst.msk [vmem:[#allocation2 + $0x30] sm:$0xf] %vm325_vm0, %v2930_v0  ;;  %341 = vst.msk [vmem:[#allocation2 + $0x38] sm:$0xf] %vm325_vm0, %v2930_v0  ;;  %v390_v20 = vrot.slane %v388_v10, 7  ;;  %v406_v22 = vrot.slane %v404_v12, 7 }
  0x73   : > { %340 = vst.msk [vmem:[#allocation2 + $0x34] sm:$0x1] %vm327_vm1, %v2930_v0  ;;  %342 = vst.msk [vmem:[#allocation2 + $0x3c] sm:$0x1] %vm327_vm1, %v2930_v0  ;;  %v3253_v4 = vld [vmem:[#allocation2] sm:$0xf] }
  0x74   : > { %343 = vst.msk [vmem:[#allocation2 + $0x40] sm:$0xf] %vm325_vm0, %v2930_v0  ;;  %345 = vst.msk [vmem:[#allocation2 + $0x48] sm:$0xf] %vm325_vm0, %v2930_v0  ;;  %v528_v5 = vld [vmem:[#allocation2 + $0x4] sm:$0x1]  ;;  %v393_v32 = vor.u32 %v391_v11, %v390_v20  ;;  %v409_v34 = vor.u32 %v407_v13, %v406_v22 }
  0x75   : > { %344 = vst.msk [vmem:[#allocation2 + $0x44] sm:$0x1] %vm327_vm1, %v2930_v0  ;;  %346 = vst.msk [vmem:[#allocation2 + $0x4c] sm:$0x1] %vm327_vm1, %v2930_v0  ;;  %v3256_v9 = vcombine.low %v3253_v4, %v528_v5  ;;  %v471_v17 = vld [vmem:[#allocation2 + $0x8] sm:$0xf] }
  0x76   : > { %vm3261_vm4 = vmand %vm325_vm0, %vm469_vm2  ;;  %v477_v21 = vld [vmem:[#allocation2 + $0xc] sm:$0x1]  ;;  %v351_v24 = vld [vmem:[%s3195_s8 + $0x20] sm:$0xff]  ;;  %v398_v29 = vrot.slane %v396_v18, 7  ;;  %v394_v33 = vrot.slane %v390_v20, 4  ;;  %v410_v35 = vrot.slane %v406_v22, 4 }
  0x77   : > { %v589_v14 = vshrl.u32 %v3256_v9, 16  ;;  %v591_v15 = vshll.u32 %v3256_v9, 16  ;;  %vm3269_vm5 = vmand %vm327_vm1, %vm475_vm3  ;;  %v486_v27 = vld [vmem:[#allocation2 + $0x18] sm:$0xf]  ;;  %v489_v28 = vld [vmem:[#allocation2 + $0x1c] sm:$0x1]  ;;  %v2525_v31 = vpack.c.bf16 %v351_v24, %v351_v24  ;;  %v472_v44 = vsel %vm3261_vm4, %v393_v32, %v471_v17 }
  0x78   : > { %v480_v36 = vld [vmem:[#allocation2 + $0x10] sm:$0xf]  ;;  %v483_v37 = vld [vmem:[#allocation2 + $0x14] sm:$0x1]  ;;  %v401_v39 = vor.u32 %v399_v19, %v398_v29  ;;  %v402_v40 = vrot.slane %v398_v29, 4  ;;  %v412_v41 = vshrl.u32 %v2524_v30, 16  ;;  %v478_v45 = vsel %vm3269_vm5, %v394_v33, %v477_v21 }
  0x79   : > { %v593_v25 = vrot.slane %v591_v15, 1  ;;  %v352_v42 = vld [vmem:[%s3195_s8 + $0x28] sm:$0xff]  ;;  %v353_v43 = vld [vmem:[%s3195_s8 + $0x30] sm:$0xff]  ;;  %v487_v46 = vsel %vm3261_vm4, %v409_v34, %v486_v27  ;;  %v490_v47 = vsel %vm3269_vm5, %v410_v35, %v489_v28  ;;  %v354_v48 = vld [vmem:[%s3195_s8 + $0x38] sm:$0xff]  ;;  %s2931_s0 = smov 16   ;;  %v415_v52 = vshll.u32 %v2524_v30, 16 }
  0x7a   : > { %473 = vst [vmem:[#allocation2 + $0x8] sm:$0xf] %v472_v44  ;;  %479 = vst [vmem:[#allocation2 + $0xc] sm:$0x1] %v478_v45  ;;  %v481_v49 = vsel %vm3261_vm4, %v401_v39, %v480_v36  ;;  %v484_v50 = vsel %vm3269_vm5, %v402_v40, %v483_v37  ;;  %v414_v51 = vrot.slane %v412_v41, 7  ;;  %v420_v55 = vshrl.u32 %v2525_v31, 16 }
  0x7b   : > { %v594_v38 = vor.u32 %v593_v25, %v589_v14  ;;  %488 = vst [vmem:[#allocation2 + $0x18] sm:$0xf] %v487_v46  ;;  %491 = vst [vmem:[#allocation2 + $0x1c] sm:$0x1] %v490_v47  ;;  %v492_v53 = vld [vmem:[#allocation2 + $0x20] sm:$0xf]  ;;  %v2526_v57 = vpack.c.bf16 %v352_v42, %v352_v42  ;;  %v2527_v58 = vpack.c.bf16 %v353_v43, %v353_v43 }
  0x7c   : > { %482 = vst [vmem:[#allocation2 + $0x10] sm:$0xf] %v481_v49  ;;  %485 = vst [vmem:[#allocation2 + $0x14] sm:$0x1] %v484_v50  ;;  %v495_v54 = vld [vmem:[#allocation2 + $0x24] sm:$0x1]  ;;  %v417_v59 = vor.u32 %v415_v52, %v414_v51  ;;  %v2528_v63 = vpack.c.bf16 %v354_v48, %v354_v48 }
  0x7d   : > { %644 = vrot.lane.b32.xlu0 %v594_v38, %s2931_s0  ;;  %v423_v56 = vshll.u32 %v2525_v31, 16  ;;  %v418_v60 = vrot.slane %v414_v51, 4  ;;  %v498_v61 = vld [vmem:[#allocation2 + $0x28] sm:$0xf]  ;;  %v501_v62 = vld [vmem:[#allocation2 + $0x2c] sm:$0x1] }
  0x7e   : > { %v2705_v1 = vld [vmem:[%s3202_s10 + $0x4] ss:$8 sps:$4 sm:$0xff]   ;;  %v422_v2 = vrot.slane %v420_v55, 7  ;;  %v428_v3 = vshrl.u32 %v2526_v57, 16  ;;  %v431_v5 = vshll.u32 %v2526_v57, 16  ;;  %v436_v6 = vshrl.u32 %v2527_v58, 16 }
  0x7f   : > { %v493_v7 = vsel %vm3261_vm4, %v417_v59, %v492_v53  ;;  %v496_v8 = vsel %vm3269_vm5, %v418_v60, %v495_v54  ;;  %v439_v10 = vshll.u32 %v2527_v58, 16  ;;  %v444_v11 = vshrl.u32 %v2528_v63, 16  ;;  %863 = vmatprep.subr.bf16.mxu0 %v2705_v1  ;;  %v2707_v12 = vld [vmem:[%s3202_s10] ss:$8 sps:$4 sm:$0xff]   ;;  %v2708_v19 = vld [vmem:[%s3202_s10 + $0x14] ss:$8 sps:$4 sm:$0xff]  }
  0x80   : > { %494 = vst [vmem:[#allocation2 + $0x20] sm:$0xf] %v493_v7  ;;  %497 = vst [vmem:[#allocation2 + $0x24] sm:$0x1] %v496_v8  ;;  %v425_v13 = vor.u32 %v423_v56, %v422_v2  ;;  %v426_v14 = vrot.slane %v422_v2, 4  ;;  %v430_v15 = vrot.slane %v428_v3, 7  ;;  %864 = vmatpush1.bf16.msra.mxu0 %v2707_v12 }
  0x81   : > { %v504_v17 = vld [vmem:[#allocation2 + $0x30] sm:$0xf]  ;;  %v438_v18 = vrot.slane %v436_v6, 7  ;;  %v507_v20 = vld [vmem:[#allocation2 + $0x34] sm:$0x1]  ;;  %v446_v21 = vrot.slane %v444_v11, 7  ;;  %865 = vmatprep.subr.bf16.mxu0 %v2708_v19 }
  0x82   : > { %v447_v22 = vshll.u32 %v2528_v63, 16  ;;  %v3296_v23 = vld [vmem:[#allocation2 + $0x8] sm:$0xf]  ;;  %v530_v24 = vld [vmem:[#allocation2 + $0xc] sm:$0x1]  ;;  %v499_v27 = vsel %vm3261_vm4, %v425_v13, %v498_v61  ;;  %v502_v28 = vsel %vm3269_vm5, %v426_v14, %v501_v62  ;;  %v433_v29 = vor.u32 %v431_v5, %v430_v15  ;;  %s2932_s12 = smov 32  }
  0x83   : > { %v3298_v25 = vld [vmem:[#allocation2 + $0x18] sm:$0xf]  ;;  %v513_v31 = vld [vmem:[#allocation2 + $0x3c] sm:$0x1]  ;;  %v3305_v32 = vcombine.low %v3296_v23, %v530_v24  ;;  %v3307_v34 = vld [vmem:[#allocation2 + $0x10] sm:$0xf]  ;;  %v441_v36 = vor.u32 %v439_v10, %v438_v18  ;;  %v2364_v46 = vcombine.low %v3296_v23, %v3296_v23 }
  0x84   : > { %v510_v30 = vld [vmem:[#allocation2 + $0x38] sm:$0xf]  ;;  %v534_v33 = vld [vmem:[#allocation2 + $0x1c] sm:$0x1]  ;;  %v532_v35 = vld [vmem:[#allocation2 + $0x14] sm:$0x1]  ;;  %v505_v41 = vsel %vm3261_vm4, %v433_v29, %v504_v17  ;;  %v449_v43 = vor.u32 %v447_v22, %v446_v21  ;;  %v2365_v5 = vcombine.low %v3307_v34, %v3307_v34 }
  0x85   : > { %500 = vst [vmem:[#allocation2 + $0x28] sm:$0xf] %v499_v27  ;;  %503 = vst [vmem:[#allocation2 + $0x2c] sm:$0x1] %v502_v28  ;;  %v3310_v37 = vcombine.low %v3298_v25, %v534_v33  ;;  %v434_v38 = vrot.slane %v430_v15, 4  ;;  %936 = vrot.lane.b32.xlu1 %v3305_v32, %s2932_s12  ;;  %v3316_v40 = vcombine.low %v3307_v34, %v532_v35  ;;  %v442_v42 = vrot.slane %v438_v18, 4 }
  0x86   : > { %v2710_v39 = vld [vmem:[%s3202_s10 + $0x10] ss:$8 sps:$4 sm:$0xff]   ;;  %v2711_v45 = vld [vmem:[%s3202_s10 + $0x24] ss:$8 sps:$4 sm:$0xff]   ;;  %v598_v47 = vshll.u32 %v3305_v32, 16  ;;  %v511_v51 = vsel %vm3261_vm4, %v441_v36, %v510_v30  ;;  %v450_v54 = vrot.slane %v446_v21, 4 }
  0x87   : > { %v516_v44 = vld [vmem:[#allocation2 + $0x40] sm:$0xf]  ;;  %940 = vrot.lane.b32.xlu0 %v3310_v37, %s2932_s12  ;;  %506 = vst [vmem:[#allocation2 + $0x30] sm:$0xf] %v505_v41  ;;  %v508_v48 = vsel %vm3269_vm5, %v434_v38, %v507_v20  ;;  %866 = vmatpush1.bf16.msra.mxu0 %v2710_v39  ;;  %v536_v50 = vld [vmem:[#allocation2 + $0x24] sm:$0x1]  ;;  %v514_v52 = vsel %vm3269_vm5, %v442_v42, %v513_v31 }
  0x88   : > { %v3328_v49 = vld [vmem:[#allocation2 + $0x20] sm:$0xf]  ;;  %509 = vst [vmem:[#allocation2 + $0x34] sm:$0x1] %v508_v48  ;;  %v519_v53 = vld [vmem:[#allocation2 + $0x44] sm:$0x1]  ;;  %867 = vmatprep.subr.bf16.mxu0 %v2711_v45  ;;  %v517_v57 = vsel %vm3261_vm4, %v449_v43, %v516_v44  ;;  %v2366_v44 = vcombine.low %v3298_v25, %v3298_v25 }
  0x89   : > { %512 = vst [vmem:[#allocation2 + $0x38] sm:$0xf] %v511_v51  ;;  %515 = vst [vmem:[#allocation2 + $0x3c] sm:$0x1] %v514_v52  ;;  %v2713_v55 = vld [vmem:[%s3202_s10 + $0x20] ss:$8 sps:$4 sm:$0xff]   ;;  %938 = vrot.lane.b32.xlu1 %v3316_v40, %s2932_s12  ;;  %v3338_v56 = vcombine.low %v3328_v49, %v536_v50  ;;  %v520_v63 = vsel %vm3269_vm5, %v450_v54, %v519_v53  ;;  %v2367_v45 = vcombine.low %v3328_v49, %v3328_v49 }
  0x8a   : > { %v2714_v58 = vld [vmem:[%s3202_s10 + $0x44] ss:$8 sps:$4 sm:$0xff]   ;;  %v596_v61 = vshrl.u32 %v3305_v32, 16  ;;  %v600_v62 = vrot.slane %v598_v47, 1  ;;  %518 = vst [vmem:[#allocation2 + $0x40] sm:$0xf] %v517_v57 }
  0x8b   : > { %670 = vrot.lane.b32.xlu0 %v2364_v46, %s2932_s12  ;;  %868 = vmatpush1.bf16.msra.mxu0 %v2713_v55  ;;  %521 = vst [vmem:[#allocation2 + $0x44] sm:$0x1] %v520_v63  ;;  %v2716_v16 = vld [vmem:[%s3202_s10 + $0x34] ss:$8 sps:$4 sm:$0xff]   ;;  %v2718_v2 = vld [vmem:[%s3202_s10 + $0x40] ss:$8 sps:$4 sm:$0xff]  }
  0x8c   : > { %v3344_v59 = vld [vmem:[#allocation2 + $0x28] sm:$0xf]  ;;  %v538_v60 = vld [vmem:[#allocation2 + $0x2c] sm:$0x1]  ;;  %1212 = vmatprep.subr.bf16.mxu1 %v2714_v58  ;;  %v605_v26 = vshll.u32 %v3316_v40, 16  ;;  %869 = vmatprep.subr.bf16.mxu0 %v2716_v16  ;;  %v601_v6 = vor.u32 %v600_v62, %v596_v61  ;;  %v603_v13 = vshrl.u32 %v3316_v40, 16 }
  0x8d   : > { %v3350_v1 = vcombine.low %v3344_v59, %v538_v60  ;;  %v2719_v3 = vld [vmem:[%s3202_s10 + $0x30] ss:$8 sps:$4 sm:$0xff]   ;;  %942 = vrot.lane.b32.xlu1 %v3338_v56, %s2932_s12  ;;  %1213 = vmatpush1.bf16.msra.mxu1 %v2718_v2  ;;  %v2720_v10 = vld [vmem:[%s3202_s10 + $0x54] ss:$8 sps:$4 sm:$0xff]   ;;  %v612_v15 = vshll.u32 %v3310_v37, 16  ;;  %v610_v20 = vshrl.u32 %v3310_v37, 16  ;;  %v2368_v62 = vcombine.low %v3344_v59, %v3344_v59 }
  0x8e   : > { %v3362_v7 = vld [vmem:[#allocation2 + $0x30] sm:$0xf]  ;;  %1214 = vmatprep.subr.bf16.mxu1 %v2720_v10  ;;  %v2722_v11 = vld [vmem:[%s3202_s10 + $0x50] ss:$8 sps:$4 sm:$0xff]   ;;  %v607_v14 = vrot.slane %v605_v26, 1  ;;  %v619_v22 = vshll.u32 %v3338_v56, 16 }
  0x8f   : > { %944 = vrot.lane.b32.xlu0 %v3350_v1, %s2932_s12  ;;  %v540_v8 = vld [vmem:[#allocation2 + $0x34] sm:$0x1]  ;;  %870 = vmatpush1.bf16.msra.mxu0 %v2719_v3  ;;  %v2725_v18 = vld [vmem:[%s3202_s10 + $0x60] ss:$8 sps:$4 sm:$0xff]   ;;  %v614_v21 = vrot.slane %v612_v15, 1  ;;  %s2933_s11 = smov 48   ;;  %v2369_v2 = vcombine.low %v3362_v7, %v3362_v7 }
  0x90   : > { %v3368_v12 = vcombine.low %v3362_v7, %v540_v8  ;;  %v2723_v17 = vld [vmem:[%s3202_s10 + $0x64] ss:$8 sps:$4 sm:$0xff]   ;;  %v608_v19 = vor.u32 %v607_v14, %v603_v13  ;;  %v2726_v24 = vld [vmem:[%s3202_s10 + $0x74] ss:$8 sps:$4 sm:$0xff]   ;;  %v2728_v27 = vld [vmem:[%s3202_s10 + $0x70] ss:$8 sps:$4 sm:$0xff]  }
  0x91   : > { %672 = vrot.lane.b32.xlu1 %v2365_v5, %s2932_s12  ;;  %1215 = vmatpush1.bf16.msra.mxu1 %v2722_v11  ;;  %v615_v28 = vor.u32 %v614_v21, %v610_v20  ;;  %v617_v29 = vshrl.u32 %v3338_v56, 16  ;;  %v621_v30 = vrot.slane %v619_v22, 1  ;;  %v626_v31 = vshll.u32 %v3350_v1, 16  ;;  %v3389_v38 = vld [vmem:[#allocation2 + $0x38] sm:$0xf]  ;;  %p311_p5 = scmp.lt.s32.totalorder %s2907_s23, 1 }
  0x92   : > { %1216 = vmatprep.subr.bf16.mxu1 %v2723_v17  ;;  %v624_v35 = vshrl.u32 %v3350_v1, 16  ;;  %v542_v39 = vld [vmem:[#allocation2 + $0x3c] sm:$0x1]  ;;  %v633_v42 = vshll.u32 %v3368_v12, 16  ;;  %v631_v46 = vshrl.u32 %v3368_v12, 16  ;;  %v2370_v8 = vcombine.low %v3389_v38, %v3389_v38  ;;  %p313_p11 = scmp.lt.s32.totalorder %s2911_s24, 1 }
  0x93   : > { %646 = vrot.lane.b32.xlu0 %v601_v6, %s2931_s0  ;;  %v622_v33 = vor.u32 %v621_v30, %v617_v29  ;;  %v628_v36 = vrot.slane %v626_v31, 1  ;;  %v3394_v43 = vcombine.low %v3389_v38, %v542_v39  ;;  %v3408_v53 = vld [vmem:[#allocation2 + $0x40] sm:$0xf]  ;;  %v544_v54 = vld [vmem:[#allocation2 + $0x44] sm:$0x1]  ;;  %vm712_vm6 = vcmask 130048  }
  0x94   : > { %v635_v47 = vrot.slane %v633_v42, 1  ;;  %v2731_v55 = vld [vmem:[%s3202_s10 + $0x84] ss:$8 sps:$4 sm:$0xff]   ;;  %v3415_v60 = vcombine.low %v3408_v53, %v544_v54  ;;  %v545_v63 = vld [vmem:[#allocation2 + $0x48] sm:$0xf]  ;;  %v2371_v11 = vcombine.low %v3408_v53, %v3408_v53  ;;  %vm737_vm7 = vcmask 261120  }
  0x95   : > { %946 = vrot.lane.b32.xlu1 %v3368_v12, %s2932_s12  ;;  %1217 = vmatpush1.bf16.msra.mxu1 %v2725_v18  ;;  %v629_v41 = vor.u32 %v628_v36, %v624_v35  ;;  %v640_v48 = vshll.u32 %v3394_v43, 16  ;;  %v638_v51 = vshrl.u32 %v3394_v43, 16  ;;  %v2734_v58 = vld [vmem:[%s3202_s10 + $0xc4] ss:$8 sps:$4 sm:$0xff]   ;;  %v546_v16 = vld [vmem:[#allocation2 + $0x4c] sm:$0x1]  ;;  %v2429_v17 = vcombine.low %v545_v63, %v545_v63 }
  0x96   : > { %1218 = vmatprep.subr.bf16.mxu1 %v2726_v24  ;;  %v636_v50 = vor.u32 %v635_v47, %v631_v46  ;;  %1378 = vmatprep.subr.bf16.mxu0 %v2731_v55  ;;  %v692_v61 = vshll.u32 %v3415_v60, 16  ;;  %v690_v3 = vshrl.u32 %v3415_v60, 16  ;;  %v2430_v26 = vcombine.low %v545_v63, %v546_v16  ;;  %s312_s3 = scalar_select %p311_p5, %s2907_s23, 1 }
  0x97   : > { %696 = vrot.lane.b32.xlu0 %v601_v6, %s2933_s11  ;;  %v642_v52 = vrot.slane %v640_v48, 1  ;;  %vm754_vm8 = vcmask 392192   ;;  %vm850_vm9 = vcmask 523264   ;;  %vm1024_vm10 = vsmask.f32 3328  ;;  %s314_s9 = scalar_select %p313_p11, %s2911_s24, 1 }
  0x98   : > { %v694_v5 = vrot.slane %v692_v61, 1  ;;  %v1298_v10 = vshll.u32 %v2430_v26, 16  ;;  %v1296_v13 = vshrl.u32 %v2430_v26, 16  ;;  %vm1025_vm11 = vsmask.f32 7440  ;;  %s2344_s13 = sshll.u32 %s2911_s24, 1 }
  0x99   : > { %698 = vrot.lane.b32.xlu1 %v608_v19, %s2933_s11  ;;  %1219 = vmatpush1.bf16.msra.mxu1 %v2728_v27  ;;  %v643_v57 = vor.u32 %v642_v52, %v638_v51  ;;  %vm3491_vm12 = vmor %vm1024_vm10, %vm1025_vm11  ;;  %s2346_s28 = sshll.u32 %s312_s3, 2  ;;  %s2345_s17 = sshll.u32 %s314_s9, 1  ;;  %vm1828_vm13 = vcmask 1040384  }
  0x9a   : > { %1542 = vmatprep.subr.bf16.mxu1 %v2734_v58  ;;  %v695_v6 = vor.u32 %v694_v5, %v690_v3  ;;  %v1300_v14 = vrot.slane %v1298_v10, 1  ;;  %s317_s6 = sadd.s32 %s2346_s28, %s2345_s17  ;;  %p305_p2 = scmp.lt.s32.totalorder %s2344_s13, 3 }
  0x9b   : > { %648 = vrot.lane.b32.xlu0 %v608_v19, %s2931_s0  ;;  %s2347_s25 = sshll.u32 %s317_s6, 1  ;;  %p4028_p10 = scmp.ne.s32.totalorder %s4009_s5, 0 }
  0x9c   : > { %v1301_v15 = vor.u32 %v1300_v14, %v1296_v13  ;;  %v2743_v14 = vld [vmem:[%s3202_s10 + $0xa4] ss:$8 sps:$4 sm:$0xff]   ;;  %s3656_s20 = scalar_lea.vmem %s3990_s4, %s2347_s25  ;;  %s4054_s13 = smov (!%p305_p2, %s2344_s13), 3 }
  0x9d   : > { %650 = vrot.lane.b32.xlu1 %v615_v28, %s2931_s0  ;;  %s2515_s9 = sshll.u32 (%p4028_p10), %s2907_s23, 7  ;;  %s4029_s6 = sld [smem:[#allocation15_spill]] (%p4028_p10) }
  0x9f   : > { %700 = vrot.lane.b32.xlu0 %v615_v28, %s2933_s11 }
  0xa1   : > { %702 = vrot.lane.b32.xlu1 %v622_v33, %s2933_s11 }
  0xa3   : > { %652 = vrot.lane.b32.xlu0 %v622_v33, %s2931_s0 }
  0xa5   : > { %654 = vrot.lane.b32.xlu1 %v629_v41, %s2931_s0 }
  0xa7   : > { %674 = vrot.lane.b32.xlu0 %v2366_v44, %s2932_s12 }
  0xa9   : > { %676 = vrot.lane.b32.xlu1 %v2367_v45, %s2932_s12 }
  0xab   : > { %704 = vrot.lane.b32.xlu0 %v629_v41, %s2933_s11 }
  0xad   : > { %706 = vrot.lane.b32.xlu1 %v636_v50, %s2933_s11 }
  0xaf   : > { %656 = vrot.lane.b32.xlu0 %v636_v50, %s2931_s0 }
  0xb1   : > { %658 = vrot.lane.b32.xlu1 %v643_v57, %s2931_s0 }
  0xb3   : > { %948 = vrot.lane.b32.xlu0 %v3394_v43, %s2932_s12 }
  0xb5   : > { %950 = vrot.lane.b32.xlu1 %v3415_v60, %s2932_s12 }
  0xb7   : > { %678 = vrot.lane.b32.xlu0 %v2368_v62, %s2932_s12 }
  0xb9   : > { %680 = vrot.lane.b32.xlu1 %v2369_v2, %s2932_s12 }
  0xbb   : > { %708 = vrot.lane.b32.xlu0 %v643_v57, %s2933_s11  ;;  %v2737_v57 = vld [vmem:[%s3202_s10 + $0x94] ss:$8 sps:$4 sm:$0xff]  }
  0xbd   : > { %710 = vrot.lane.b32.xlu1 %v695_v6, %s2933_s11 }
  0xbf   : > { %682 = vrot.lane.b32.xlu0 %v2370_v8, %s2932_s12 }
  0xc1   : > { %684 = vrot.lane.b32.xlu1 %v2371_v11, %s2932_s12 }
  0xc3   : > { %1285 = vrot.lane.b32.xlu0 %v695_v6, %s2931_s0  ;;  %s307_s0 = scalar_lea.vmem %s3988_s2, %s4054_s13 }
  0xc5   : > { %1451 = vrot.lane.b32.xlu1 %v2430_v26, %s2932_s12 }
  0xc7   : > { %1302 = vrot.lane.b32.xlu0 %v1301_v15, %s2933_s11 }
  0xc9   : > { %1290 = vrot.lane.b32.xlu1 %v2429_v17, %s2932_s12  ;;  %s289_s12 = sand.u32 1, %s2875_s15   ;;  %s2514_s15 = sshll.u32 (%p4028_p10), %s2911_s24, 2 }
  0xca   : > { %s2343_s11 = sshll.u32 %s289_s12, 8  ;;  %s2089_s5 = sadd.s32 (%p4028_p10), %s2515_s9, %s2514_s15 }
  0xcb   : > { %s3675_s3 = scalar_lea.vmem [#allocation7], %s2343_s11  ;;  %s2516_s13 = sshll.u32 (%p4028_p10), %s2089_s5, 2 }
  0xcc   : > { %s3884_s25 = scalar_lea.vmem (%p4028_p10), %s4029_s6, %s2516_s13 }
  0xef   : > { %v645_v18 = vpop.permute.xlu0 %644 }
  0xf0   : > { %v952_v30 = vsel %vm712_vm6, %v3256_v9, %v645_v18  ;;  %v715_v42 = vsel %vm712_vm6, %v3253_v4, %v645_v18  ;;  %v2729_v4 = vld [vmem:[%s3202_s10 + $0x80] ss:$8 sps:$4 sm:$0xff]  }
  0xf7   : > { %v937_v19 = vpop.permute.xlu1 %936 }
  0xf8   : > { %v961_v33 = vsel %vm737_vm7, %v952_v30, %v937_v19  ;;  %v2741_v30 = vld [vmem:[%s3202_s10 + $0xa0] ss:$8 sps:$4 sm:$0xff]  }
  0xf9   : > { %v941_v20 = vpop.permute.xlu0 %940 }
  0xfb   : > { %v939_v21 = vpop.permute.xlu1 %938 }
  0xfd   : > { %v671_v22 = vpop.permute.xlu0 %670 }
  0xfe   : > { %v739_v44 = vsel %vm737_vm7, %v715_v42, %v671_v22 }
  0xff   : > { %v943_v24 = vpop.permute.xlu1 %942 }
 0x101   : > { %v3442_v27 = vpop.permute.xlu0 %944 }
 0x103   : > { %v673_v28 = vpop.permute.xlu1 %672 }
 0x105   : > { %v647_v29 = vpop.permute.xlu0 %646 }
 0x106   : > { %v718_v35 = vsel %vm712_vm6, %v3296_v23, %v647_v29  ;;  %v953_v36 = vsel %vm712_vm6, %v3305_v32, %v647_v29 }
 0x107   : > { %v3446_v31 = vpop.permute.xlu1 %946  ;;  %v741_v46 = vsel %vm737_vm7, %v718_v35, %v673_v28  ;;  %v963_v47 = vsel %vm737_vm7, %v953_v36, %v939_v21 }
 0x109   : > { %v697_v39 = vpop.permute.xlu0 %696 }
 0x10a   : > { %v976_v41 = vsel %vm754_vm8, %v961_v33, %v697_v39  ;;  %v756_v23 = vsel %vm754_vm8, %v739_v44, %v697_v39 }
 0x10b   : > { %v2389_v9 = vcombine.low %v976_v41, %v976_v41  ;;  %v699_v45 = vpop.permute.xlu1 %698  ;;  %v2390_v63 = vcombine.high %v976_v41, %v976_v41  ;;  %v2749_v41 = vld [vmem:[%s3202_s10 + $0xb4] ss:$8 sps:$4 sm:$0xff]  }
 0x10c   : > { %v3461_v50 = vsel %vm754_vm8, %v741_v46, %v699_v45  ;;  %v977_v54 = vsel %vm754_vm8, %v963_v47, %v699_v45 }
 0x10d   : > { %v1028_v48 = vshrl.u32 %v2389_v9, 16  ;;  %v1031_v32 = vshll.u32 %v2389_v9, 16  ;;  %v3463_v51 = vpop.permute.xlu0 %648  ;;  %v2373_v52 = vcombine.low %v756_v23, %v3461_v50  ;;  %v2391_v62 = vcombine.low %v977_v54, %v977_v54 }
 0x10e   : > { %v954_v55 = vsel %vm712_vm6, %v3316_v40, %v3463_v51  ;;  %v2392_v16 = vcombine.high %v977_v54, %v977_v54  ;;  %v2735_v40 = vld [vmem:[%s3202_s10 + $0x90] ss:$8 sps:$4 sm:$0xff]   ;;  %v1037_v19 = vshll.u32 %v2390_v63, 16 }
 0x10f   : > { %v1030_v58 = vrot.slane %v1028_v48, 4  ;;  %v1033_v61 = vrot.slane %v1031_v32, 5  ;;  %v651_v2 = vpop.permute.xlu1 %650  ;;  %2385 = vmatmul.mubr.msk.bf16.vlgmr.msra.gmra.mrb[0].mxu0 %vm850_vm9, %v2373_v52  ;;  %v1042_v3 = vshrl.u32 %v2391_v62, 16  ;;  %v1045_v5 = vshll.u32 %v2391_v62, 16 }
 0x110   : > { %v965_v26 = vsel %vm737_vm7, %v954_v55, %v941_v20  ;;  %905 = vmatprep.mubr.bf16.mxu0 %v2930_v0  ;;  %1379 = vmatpush1.bf16.msra.mxu0 %v2729_v4  ;;  %v1051_v10 = vshll.u32 %v2392_v16, 16  ;;  %v955_v11 = vsel %vm712_vm6, %v3310_v37, %v651_v2  ;;  %v1039_v46 = vrot.slane %v1037_v19, 5 }
 0x111   : > { %v3474_v6 = vpop.permute.xlu0 %700  ;;  %v1034_v8 = vor.u32 %v1033_v61, %v1030_v58  ;;  %1380 = vmatprep.subr.bf16.mxu0 %v2737_v57  ;;  %v1044_v15 = vrot.slane %v1042_v3, 4  ;;  %v1047_v17 = vrot.slane %v1045_v5, 5  ;;  %v967_v29 = vsel %vm737_vm7, %v955_v11, %v943_v24  ;;  %v2747_v57 = vld [vmem:[%s3202_s10 + $0xb0] ss:$8 sps:$4 sm:$0xff]   ;;  %v2732_v5 = vld [vmem:[%s3202_s10 + $0xc0] ss:$8 sps:$4 sm:$0xff]  }
 0x112   : > { %v978_v13 = vsel %vm754_vm8, %v965_v26, %v3474_v6  ;;  %v1053_v35 = vrot.slane %v1051_v10, 5  ;;  %v724_v26 = vsel %vm712_vm6, %v3298_v25, %v651_v2  ;;  %v2740_v11 = vld [vmem:[%s3202_s10 + $0xd4] ss:$8 sps:$4 sm:$0xff]  }
 0x113   : > { %v2393_v18 = vcombine.low %v978_v13, %v978_v13  ;;  %v703_v20 = vpop.permute.xlu1 %702  ;;  %v1048_v21 = vor.u32 %v1047_v17, %v1044_v15  ;;  %v1035_v33 = vrot.slane %v1034_v8, 4  ;;  %v2394_v36 = vcombine.high %v978_v13, %v978_v13 }
 0x114   : > { %1381 = vmatpush1.bf16.msra.mxu0 %v2735_v40  ;;  %v979_v39 = vsel %vm754_vm8, %v967_v29, %v703_v20 }
 0x115   : > { %v1056_v22 = vshrl.u32 %v2393_v18, 16  ;;  %v1059_v28 = vshll.u32 %v2393_v18, 16  ;;  %v3484_v37 = vpop.permute.xlu0 %652  ;;  %1382 = vmatprep.subr.bf16.mxu0 %v2743_v14  ;;  %v1049_v9 = vrot.slane %v1048_v21, 4  ;;  %v2395_v45 = vcombine.low %v979_v39, %v979_v39 }
 0x116   : > { %v2396_v47 = vcombine.high %v979_v39, %v979_v39  ;;  %v956_v23 = vsel %vm712_vm6, %v3338_v56, %v3484_v37  ;;  %v1040_v58 = vsel %vm3491_vm12, %v1035_v33, %v1039_v46  ;;  %v721_v56 = vsel %vm712_vm6, %v3307_v34, %v3463_v51 }
 0x117   : > { %v1058_v24 = vrot.slane %v1056_v22, 4  ;;  %v1061_v44 = vrot.slane %v1059_v28, 5  ;;  %v3498_v48 = vpop.permute.xlu1 %654  ;;  %v3502_v32 = vsel %vm3491_vm12, %v1049_v9, %v1053_v35  ;;  %v1070_v52 = vshrl.u32 %v2395_v45, 16  ;;  %v2738_v22 = vld [vmem:[%s3202_s10 + $0xd0] ss:$8 sps:$4 sm:$0xff]  }
 0x118   : > { %v1073_v54 = vshll.u32 %v2395_v45, 16  ;;  %1383 = vmatpush1.bf16.msra.mxu0 %v2741_v30  ;;  %v1065_v61 = vshll.u32 %v2394_v36, 16  ;;  %v1079_v16 = vshll.u32 %v2396_v47, 16  ;;  %v2413_v40 = vcombine.low %v1040_v58, %v3502_v32  ;;  %v2744_v45 = vld [vmem:[%s3202_s10 + $0xe0] ss:$8 sps:$4 sm:$0xff]  }
 0x119   : > { %v1062_v4 = vor.u32 %v1061_v44, %v1058_v24  ;;  %v675_v55 = vpop.permute.xlu0 %674  ;;  %1384 = vmatprep.subr.bf16.mxu0 %v2749_v41  ;;  %v1072_v62 = vrot.slane %v1070_v52, 4  ;;  %v969_v10 = vsel %vm737_vm7, %v956_v23, %v3442_v27  ;;  %v957_v51 = vsel %vm712_vm6, %v3350_v1, %v3498_v48  ;;  %v2752_v23 = vld [vmem:[%s3202_s10 + $0xf4] ss:$8 sps:$4 sm:$0xff]  }
 0x11a   : > { %v1075_v63 = vrot.slane %v1073_v54, 5  ;;  %v743_v3 = vsel %vm737_vm7, %v721_v56, %v675_v55  ;;  %v1067_v25 = vrot.slane %v1065_v61, 5  ;;  %2425 = vmatmul.mubr.msk.bf16.vlgmr.msra.gmra.mrb[0].mxu1 %vm850_vm9, %v2413_v40  ;;  %v1081_v18 = vrot.slane %v1079_v16, 5 }
 0x11b   : > { %v677_v8 = vpop.permute.xlu1 %676  ;;  %v1063_v13 = vrot.slane %v1062_v4, 4  ;;  %v3526_v2 = vsel %vm754_vm8, %v743_v3, %v3474_v6  ;;  %1254 = vmatprep.mubr.bf16.mxu1 %v2930_v0  ;;  %1543 = vmatpush1.bf16.msra.mxu1 %v2732_v5  ;;  %v971_v6 = vsel %vm737_vm7, %v957_v51, %v3446_v31 }
 0x11c   : > { %v1076_v34 = vor.u32 %v1075_v63, %v1072_v62  ;;  %v745_v14 = vsel %vm737_vm7, %v724_v26, %v677_v8  ;;  %1385 = vmatpush1.bf16.msra.mxu0 %v2747_v57  ;;  %1544 = vmatprep.subr.bf16.mxu1 %v2740_v11  ;;  %v2750_v62 = vld [vmem:[%s3202_s10 + $0xf0] ss:$8 sps:$4 sm:$0xff]   ;;  %v727_v26 = vsel %vm712_vm6, %v3328_v49, %v3484_v37 }
 0x11d   : > { %v3522_v15 = vpop.permute.xlu0 %704  ;;  %v3530_v27 = vsel %vm754_vm8, %v745_v14, %v703_v20  ;;  %v2746_v20 = vld [vmem:[%s3202_s10 + $0xe4] ss:$8 sps:$4 sm:$0xff]   ;;  %v3543_v29 = vsel %vm3491_vm12, %v1063_v13, %v1067_v25 }
 0x11e   : > { %v980_v17 = vsel %vm754_vm8, %v969_v10, %v3522_v15  ;;  %v1077_v1 = vrot.slane %v1076_v34, 4  ;;  %v2374_v19 = vcombine.low %v3526_v2, %v3530_v27  ;;  %v730_v34 = vsel %vm712_vm6, %v3344_v59, %v3498_v48 }
 0x11f   : > { %v2397_v21 = vcombine.low %v980_v17, %v980_v17  ;;  %v707_v28 = vpop.permute.xlu1 %706  ;;  %v2398_v41 = vcombine.high %v980_v17, %v980_v17  ;;  %1545 = vmatpush1.bf16.msra.mxu1 %v2738_v22 }
 0x120   : > { %v3547_v30 = vsel %vm3491_vm12, %v1077_v1, %v1081_v18  ;;  %2386 = vmatmul.mubr.msk.bf16.gmra.mrb[4].mxu0 %vm850_vm9, %v2374_v19  ;;  %v981_v31 = vsel %vm754_vm8, %v971_v6, %v707_v28  ;;  %1546 = vmatprep.subr.bf16.mxu1 %v2746_v20 }
 0x121   : > { %v1084_v33 = vshrl.u32 %v2397_v21, 16  ;;  %v1087_v35 = vshll.u32 %v2397_v21, 16  ;;  %v657_v36 = vpop.permute.xlu0 %656  ;;  %v2414_v39 = vcombine.low %v3543_v29, %v3547_v30  ;;  %915 = vmatprep.mubr.bf16.mxu0 %v2930_v0  ;;  %v2399_v44 = vcombine.low %v981_v31, %v981_v31 }
 0x122   : > { %v2400_v46 = vcombine.high %v981_v31, %v981_v31  ;;  %v1093_v57 = vshll.u32 %v2398_v41, 16  ;;  %v958_v40 = vsel %vm712_vm6, %v3368_v12, %v657_v36  ;;  %v733_v6 = vsel %vm712_vm6, %v3362_v7, %v657_v36 }
 0x123   : > { %v1086_v9 = vrot.slane %v1084_v33, 4  ;;  %v1089_v24 = vrot.slane %v1087_v35, 5  ;;  %v659_v47 = vpop.permute.xlu1 %658  ;;  %v1098_v52 = vshrl.u32 %v2399_v44, 16  ;;  %v1101_v54 = vshll.u32 %v2399_v44, 16  ;;  %2426 = vmatmul.mubr.msk.bf16.gmra.mrb[4].mxu1 %vm850_vm9, %v2414_v39 }
 0x124   : > { %v1107_v61 = vshll.u32 %v2400_v46, 16  ;;  %1264 = vmatprep.mubr.bf16.mxu1 %v2930_v0  ;;  %1547 = vmatpush1.bf16.msra.mxu1 %v2744_v45  ;;  %v1095_v8 = vrot.slane %v1093_v57, 5  ;;  %v959_v18 = vsel %vm712_vm6, %v3394_v43, %v659_v47  ;;  %v736_v7 = vsel %vm712_vm6, %v3389_v38, %v659_v47 }
 0x125   : > { %v1090_v4 = vor.u32 %v1089_v24, %v1086_v9  ;;  %v949_v55 = vpop.permute.xlu0 %948  ;;  %v1100_v58 = vrot.slane %v1098_v52, 4  ;;  %v1103_v56 = vrot.slane %v1101_v54, 5  ;;  %1548 = vmatprep.subr.bf16.mxu1 %v2752_v23 }
 0x126   : > { %v1109_v11 = vrot.slane %v1107_v61, 5  ;;  %v973_v12 = vsel %vm737_vm7, %v958_v40, %v949_v55 }
 0x127   : > { %v951_v63 = vpop.permute.xlu1 %950  ;;  %v1091_v16 = vrot.slane %v1090_v4, 4  ;;  %v1104_v3 = vor.u32 %v1103_v56, %v1100_v58 }
 0x128   : > { %1549 = vmatpush1.bf16.msra.mxu1 %v2750_v62  ;;  %v975_v22 = vsel %vm737_vm7, %v959_v18, %v951_v63 }
 0x129   : > { %v679_v5 = vpop.permute.xlu0 %678  ;;  %v1105_v10 = vrot.slane %v1104_v3, 4  ;;  %v3570_v14 = vsel %vm3491_vm12, %v1091_v16, %v1095_v8 }
 0x12a   : > { %v747_v13 = vsel %vm737_vm7, %v727_v26, %v679_v5  ;;  %v2466_v42 = vcombine.low %v3547_v30, %v3570_v14 }
 0x12b   : > { %v681_v51 = vpop.permute.xlu1 %680  ;;  %v3574_v49 = vsel %vm3491_vm12, %v1105_v10, %v1109_v11  ;;  %v3580_v17 = vsel %vm754_vm8, %v747_v13, %v3522_v15 }
 0x12c   : > { %v749_v37 = vsel %vm737_vm7, %v730_v34, %v681_v51  ;;  %v2415_v1 = vcombine.low %v3570_v14, %v3574_v49 }
 0x12d   : > { %v709_v25 = vpop.permute.xlu0 %708  ;;  %v3583_v59 = vsel %vm754_vm8, %v749_v37, %v707_v28 }
 0x12e   : > { %v982_v48 = vsel %vm754_vm8, %v973_v12, %v709_v25  ;;  %v2375_v19 = vcombine.low %v3580_v17, %v3583_v59  ;;  %2427 = vmatmul.mubr.msk.bf16.gmra.mrb[8].mxu1 %vm850_vm9, %v2415_v1 }
 0x12f   : > { %v2401_v21 = vcombine.low %v982_v48, %v982_v48  ;;  %v711_v15 = vpop.permute.xlu1 %710  ;;  %1274 = vmatprep.mubr.bf16.mxu1 %v2930_v0  ;;  %v2402_v41 = vcombine.high %v982_v48, %v982_v48 }
 0x130   : > { %v983_v33 = vsel %vm754_vm8, %v975_v22, %v711_v15  ;;  %2387 = vmatmul.mubr.msk.bf16.gmra.mrb[8].mxu0 %vm850_vm9, %v2375_v19 }
 0x131   : > { %v1112_v28 = vshrl.u32 %v2401_v21, 16  ;;  %v1115_v20 = vshll.u32 %v2401_v21, 16  ;;  %v683_v35 = vpop.permute.xlu0 %682  ;;  %v2403_v43 = vcombine.low %v983_v33, %v983_v33  ;;  %v2404_v31 = vcombine.high %v983_v33, %v983_v33  ;;  %925 = vmatprep.mubr.bf16.mxu0 %v2930_v0 }
 0x132   : > { %v751_v39 = vsel %vm737_vm7, %v733_v6, %v683_v35  ;;  %v1121_v56 = vshll.u32 %v2402_v41, 16 }
 0x133   : > { %v1114_v9 = vrot.slane %v1112_v28, 4  ;;  %v1117_v24 = vrot.slane %v1115_v20, 5  ;;  %v1126_v36 = vshrl.u32 %v2403_v43, 16  ;;  %v1129_v44 = vshll.u32 %v2403_v43, 16  ;;  %v685_v45 = vpop.permute.xlu1 %684  ;;  %v547_v28 = vld [vmem:[%s307_s0] sm:$0x3] }
 0x134   : > { %v768_v23 = vsel %vm754_vm8, %v751_v39, %v709_v25  ;;  %v753_v4 = vsel %vm737_vm7, %v736_v7, %v685_v45  ;;  %v1135_v57 = vshll.u32 %v2404_v31, 16  ;;  %v1123_v8 = vrot.slane %v1121_v56, 5 }
 0x135   : > { %v1118_v46 = vor.u32 %v1117_v24, %v1114_v9  ;;  %v1286_v52 = vpop.permute.xlu0 %1285  ;;  %v1128_v54 = vrot.slane %v1126_v36, 4  ;;  %v1131_v55 = vrot.slane %v1129_v44, 5  ;;  %v770_v58 = vsel %vm754_vm8, %v753_v4, %v711_v15 }
 0x136   : > { %v2376_v61 = vcombine.low %v768_v23, %v770_v58  ;;  %v1453_v62 = vsel %vm712_vm6, %v3415_v60, %v1286_v52  ;;  %v1137_v26 = vrot.slane %v1135_v57, 5  ;;  %v2439_v25 = vcombine.low %v3461_v50, %v3526_v2 }
 0x137   : > { %v1132_v38 = vor.u32 %v1131_v55, %v1128_v54  ;;  %v1452_v47 = vpop.permute.xlu1 %1451  ;;  %v1119_v63 = vrot.slane %v1118_v46, 4  ;;  %v2465_v15 = vcombine.low %v3502_v32, %v3543_v29  ;;  %v2440_v50 = vcombine.low %v3530_v27, %v3580_v17 }
 0x138   : > { %v1455_v16 = vsel %vm737_vm7, %v1453_v62, %v1452_v47  ;;  %2388 = vmatmul.mubr.msk.bf16.gmra.mrb[12].mxu0 %vm850_vm9, %v2376_v61  ;;  %v1306_v2 = vsel %vm712_vm6, %v3408_v53, %v1286_v52  ;;  %v2441_v32 = vcombine.low %v3583_v59, %v768_v23 }
 0x139   : > { %v1303_v3 = vpop.permute.xlu0 %1302  ;;  %v1133_v5 = vrot.slane %v1132_v38, 4  ;;  %1410 = vmatprep.mubr.bf16.mxu0 %v2930_v0  ;;  %v1124_v13 = vsel %vm3491_vm12, %v1119_v63, %v1123_v8 }
 0x13a   : > { %v1456_v40 = vsel %vm754_vm8, %v1455_v16, %v1303_v3  ;;  %v2467_v29 = vcombine.low %v3574_v49, %v1124_v13  ;;  %v2934_v49 = vmov 0.0  }
 0x13b   : > { %v2455_v10 = vcombine.low %v1456_v40, %v1456_v40  ;;  %v2456_v11 = vcombine.high %v1456_v40, %v1456_v40  ;;  %v1138_v60 = vsel %vm3491_vm12, %v1133_v5, %v1137_v26  ;;  %v1291_v6 = vpop.permute.xlu1 %1290  ;;  %522 = vst [vmem:[%s3656_s20] sm:$0xf] %v2934_v49 }
 0x13c   : > { %v2416_v37 = vcombine.low %v1124_v13, %v1138_v60  ;;  %v1308_v27 = vsel %vm737_vm7, %v1306_v2, %v1291_v6 }
 0x13d   : > { %v1463_v34 = vshrl.u32 %v2455_v10, 16  ;;  %v1466_v51 = vshll.u32 %v2455_v10, 16  ;;  %v1472_v12 = vshll.u32 %v2456_v11, 16  ;;  %v1310_v53 = vsel %vm754_vm8, %v1308_v27, %v1303_v3 }
 0x13e   : > { %2428 = vmatmul.mubr.msk.bf16.gmra.mrb[12].mxu1 %vm850_vm9, %v2416_v37  ;;  %v2442_v30 = vcombine.low %v770_v58, %v1310_v53 }
 0x13f   : > { %v1465_v48 = vrot.slane %v1463_v34, 4  ;;  %v1468_v1 = vrot.slane %v1466_v51, 5  ;;  %v1474_v19 = vrot.slane %v1472_v12, 5  ;;  %1574 = vmatprep.mubr.bf16.mxu1 %v2930_v0 }
 0x140   : > { %2451 = vmatmul.mubr.msk.bf16.vlgmr.msra.gmra.mrb[16].mxu0 %vm850_vm9, %v2439_v25 }
 0x141   : > { %v1469_v18 = vor.u32 %v1468_v1, %v1465_v48  ;;  %1420 = vmatprep.mubr.bf16.mxu0 %v2930_v0 }
 0x143   : > { %v1470_v21 = vrot.slane %v1469_v18, 4 }
 0x145   : > { %v1475_v22 = vsel %vm3491_vm12, %v1470_v21, %v1474_v19 }
 0x146   : > { %2477 = vmatmul.mubr.msk.bf16.vlgmr.msra.gmra.mrb[16].mxu1 %vm850_vm9, %v2465_v15  ;;  %v2468_v14 = vcombine.low %v1138_v60, %v1475_v22 }
 0x147   : > { %1584 = vmatprep.mubr.bf16.mxu1 %v2930_v0 }
 0x148   : > { %2452 = vmatmul.mubr.msk.bf16.gmra.mrb[20].mxu0 %vm850_vm9, %v2440_v50 }
 0x149   : > { %1430 = vmatprep.mubr.bf16.mxu0 %v2930_v0 }
 0x14e   : > { %2478 = vmatmul.mubr.msk.bf16.gmra.mrb[20].mxu1 %vm850_vm9, %v2466_v42 }
 0x14f   : > { %1594 = vmatprep.mubr.bf16.mxu1 %v2930_v0 }
 0x150   : > { %2453 = vmatmul.mubr.msk.bf16.gmra.mrb[24].mxu0 %vm850_vm9, %v2441_v32 }
 0x151   : > { %1440 = vmatprep.mubr.bf16.mxu0 %v2930_v0 }
 0x156   : > { %2479 = vmatmul.mubr.msk.bf16.gmra.mrb[24].mxu1 %vm850_vm9, %v2467_v29 }
 0x157   : > { %1604 = vmatprep.mubr.bf16.mxu1 %v2930_v0  ;;  %v780_v0 = vlaneseq }
 0x158   : > { %2454 = vmatmul.mubr.msk.bf16.gmra.mrb[28].mxu0 %vm850_vm9, %v2442_v30 }
 0x159   : > { %v3659_v17 = vshrl.u32 %v780_v0, 7 }
 0x15b   : > { %v782_v59 = vsub.s32 0, %v3659_v17  ;;  %v786_v20 = vsub.s32 1, %v3659_v17 }
 0x15d   : > { %v3666_v33 = vrot.slane %v547_v28, %v782_v59  ;;  %v3669_v35 = vrot.slane %v547_v28, %v786_v20 }
 0x15e   : > { %2480 = vmatmul.mubr.msk.bf16.gmra.mrb[28].mxu1 %vm850_vm9, %v2468_v14 }
 0x1e2   : > { %v897_v43 = vpop.f32.mrb[0].mxu0 }
 0x1e3   : > { %v898_v31 = vadd.f32 %v897_v43, %v3666_v33  ;;  %v899_v39 = vpop.f32.mrb[1].mxu0 }
 0x1e4   : > { %v900_v41 = vadd.f32 %v899_v39, %v3669_v35  ;;  %v901_v9 = vpop.f32.mrb[2].mxu0 }
 0x1e5   : > { %v902_v24 = vadd.f32 %v901_v9, %v3666_v33  ;;  %v903_v7 = vpop.f32.mrb[3].mxu0  ;;  %v1689_v52 = vmul.f32 %v898_v31, %v898_v31 }
 0x1e6   : > { %v2529_v36 = vpack.c.bf16 %v900_v41, %v898_v31  ;;  %v904_v44 = vadd.f32 %v903_v7, %v3669_v35  ;;  %v1690_v54 = vmul.f32 %v900_v41, %v900_v41 }
 0x1e7   : > { %v1691_v55 = vmul.f32 %v902_v24, %v902_v24 }
 0x1e8   : > { %2036 = vst [vmem:[%s3675_s3] sm:$0xff] %v2529_v36  ;;  %v2533_v45 = vpack.c.bf16 %v904_v44, %v902_v24  ;;  %v1692_v56 = vmul.f32 %v904_v44, %v904_v44 }
 0x1ea   : > { %2040 = vst [vmem:[%s3675_s3 + $0x20] sm:$0xff] %v2533_v45 }
 0x1ed   : > { %v1246_v46 = vpop.f32.mrb[0].mxu1 }
 0x1ee   : > { %v1247_v23 = vadd.f32 %v1246_v46, %v3666_v33  ;;  %v1248_v4 = vpop.f32.mrb[1].mxu1 }
 0x1ef   : > { %v1249_v57 = vadd.f32 %v1248_v4, %v3669_v35  ;;  %v1250_v58 = vpop.f32.mrb[2].mxu1 }
 0x1f0   : > { %v3681_v61 = vadd.f32 %v1247_v23, %v898_v31  ;;  %v1705_v62 = vmul.f32 %v1247_v23, %v1247_v23  ;;  %v1251_v38 = vadd.f32 %v1250_v58, %v3666_v33  ;;  %v1252_v47 = vpop.f32.mrb[3].mxu1 }
 0x1f1   : > { %v3684_v16 = vadd.f32 %v1249_v57, %v900_v41  ;;  %v1706_v3 = vmul.f32 %v1249_v57, %v1249_v57  ;;  %v2530_v5 = vpack.c.bf16 %v1249_v57, %v1247_v23  ;;  %v1253_v26 = vadd.f32 %v1252_v47, %v3669_v35 }
 0x1f2   : > { %v3687_v8 = vadd.f32 %v1705_v62, %v1689_v52  ;;  %v3689_v10 = vadd.f32 %v1251_v38, %v902_v24  ;;  %v1707_v11 = vmul.f32 %v1251_v38, %v1251_v38 }
 0x1f3   : > { %v907_v63 = vpop.f32.mrb[4].mxu0  ;;  %v3692_v34 = vadd.f32 %v1706_v3, %v1690_v54  ;;  %2037 = vst [vmem:[%s3675_s3 + $0x8] sm:$0xff] %v2530_v5  ;;  %v3695_v51 = vadd.f32 %v1253_v26, %v904_v44  ;;  %v1708_v12 = vmul.f32 %v1253_v26, %v1253_v26  ;;  %v2534_v37 = vpack.c.bf16 %v1253_v26, %v1251_v38 }
 0x1f4   : > { %v909_v40 = vpop.f32.mrb[5].mxu0  ;;  %v908_v60 = vadd.f32 %v907_v63, %v3666_v33  ;;  %v3697_v48 = vadd.f32 %v1707_v11, %v1691_v55 }
 0x1f5   : > { %v911_v13 = vpop.f32.mrb[6].mxu0  ;;  %v910_v1 = vadd.f32 %v909_v40, %v3669_v35  ;;  %v3701_v19 = vadd.f32 %v1708_v12, %v1692_v56  ;;  %2041 = vst [vmem:[%s3675_s3 + $0x28] sm:$0xff] %v2534_v37 }
 0x1f6   : > { %v913_v25 = vpop.f32.mrb[7].mxu0  ;;  %v912_v18 = vadd.f32 %v911_v13, %v3666_v33  ;;  %v1256_v21 = vpop.f32.mrb[4].mxu1  ;;  %v1693_v6 = vmul.f32 %v908_v60, %v908_v60 }
 0x1f7   : > { %v914_v22 = vadd.f32 %v913_v25, %v3669_v35  ;;  %v2537_v15 = vpack.c.bf16 %v910_v1, %v908_v60  ;;  %v1257_v50 = vadd.f32 %v1256_v21, %v3666_v33  ;;  %v1258_v2 = vpop.f32.mrb[5].mxu1  ;;  %v1694_v42 = vmul.f32 %v910_v1, %v910_v1 }
 0x1f8   : > { %v1259_v27 = vadd.f32 %v1258_v2, %v3669_v35  ;;  %v1260_v53 = vpop.f32.mrb[6].mxu1  ;;  %v1695_v29 = vmul.f32 %v912_v18, %v912_v18 }
 0x1f9   : > { %v2541_v32 = vpack.c.bf16 %v914_v22, %v912_v18  ;;  %2044 = vst [vmem:[%s3675_s3 + $0x40] sm:$0xff] %v2537_v15  ;;  %v3708_v30 = vadd.f32 %v1257_v50, %v908_v60  ;;  %v1709_v14 = vmul.f32 %v1257_v50, %v1257_v50  ;;  %v1261_v0 = vadd.f32 %v1260_v53, %v3666_v33  ;;  %v1262_v49 = vpop.f32.mrb[7].mxu1 }
 0x1fa   : > { %v3712_v59 = vadd.f32 %v1259_v27, %v910_v1  ;;  %v1710_v28 = vmul.f32 %v1259_v27, %v1259_v27  ;;  %v2538_v20 = vpack.c.bf16 %v1259_v27, %v1257_v50  ;;  %v1263_v43 = vadd.f32 %v1262_v49, %v3669_v35 }
 0x1fb   : > { %2048 = vst [vmem:[%s3675_s3 + $0x60] sm:$0xff] %v2541_v32  ;;  %v3715_v31 = vadd.f32 %v1709_v14, %v1693_v6  ;;  %v1696_v39 = vmul.f32 %v914_v22, %v914_v22  ;;  %v3717_v41 = vadd.f32 %v1261_v0, %v912_v18  ;;  %v1711_v9 = vmul.f32 %v1261_v0, %v1261_v0 }
 0x1fc   : > { %v3719_v24 = vadd.f32 %v1710_v28, %v1694_v42  ;;  %2045 = vst [vmem:[%s3675_s3 + $0x48] sm:$0xff] %v2538_v20  ;;  %v3722_v7 = vadd.f32 %v1263_v43, %v914_v22  ;;  %v1712_v36 = vmul.f32 %v1263_v43, %v1263_v43  ;;  %v2542_v44 = vpack.c.bf16 %v1263_v43, %v1261_v0 }
 0x1fd   : > { %v3724_v45 = vadd.f32 %v1711_v9, %v1695_v29 }
 0x1fe   : > { %v3726_v46 = vadd.f32 %v1712_v36, %v1696_v39  ;;  %2049 = vst [vmem:[%s3675_s3 + $0x68] sm:$0xff] %v2542_v44 }
 0x201   : > { %v1266_v23 = vpop.f32.mrb[8].mxu1 }
 0x202   : > { %v1267_v4 = vadd.f32 %v1266_v23, %v3666_v33  ;;  %v1268_v52 = vpop.f32.mrb[9].mxu1 }
 0x203   : > { %v917_v54 = vpop.f32.mrb[8].mxu0  ;;  %v1269_v55 = vadd.f32 %v1268_v52, %v3669_v35  ;;  %v1270_v58 = vpop.f32.mrb[10].mxu1 }
 0x204   : > { %v918_v57 = vadd.f32 %v917_v54, %v3666_v33  ;;  %v919_v56 = vpop.f32.mrb[9].mxu0  ;;  %v1713_v62 = vmul.f32 %v1267_v4, %v1267_v4  ;;  %v1272_v47 = vpop.f32.mrb[11].mxu1  ;;  %v1271_v40 = vadd.f32 %v1270_v58, %v3666_v33 }
 0x205   : > { %v920_v38 = vadd.f32 %v919_v56, %v3669_v35  ;;  %v921_v63 = vpop.f32.mrb[10].mxu0  ;;  %v2546_v3 = vpack.c.bf16 %v1269_v55, %v1267_v4  ;;  %v1714_v60 = vmul.f32 %v1269_v55, %v1269_v55  ;;  %v1273_v1 = vadd.f32 %v1272_v47, %v3669_v35 }
 0x206   : > { %v3733_v5 = vadd.f32 %v1267_v4, %v918_v57  ;;  %v1697_v26 = vmul.f32 %v918_v57, %v918_v57  ;;  %v923_v11 = vpop.f32.mrb[11].mxu0  ;;  %v922_v18 = vadd.f32 %v921_v63, %v3666_v33  ;;  %v1715_v15 = vmul.f32 %v1271_v40, %v1271_v40 }
 0x207   : > { %v3736_v13 = vadd.f32 %v1269_v55, %v920_v38  ;;  %v1698_v12 = vmul.f32 %v920_v38, %v920_v38  ;;  %v2545_v37 = vpack.c.bf16 %v920_v38, %v918_v57  ;;  %2053 = vst [vmem:[%s3675_s3 + $0x88] sm:$0xff] %v2546_v3  ;;  %v924_v21 = vadd.f32 %v923_v11, %v3669_v35 }
 0x208   : > { %v3739_v25 = vadd.f32 %v1713_v62, %v1697_v26  ;;  %v2550_v50 = vpack.c.bf16 %v1273_v1, %v1271_v40  ;;  %v3747_v2 = vadd.f32 %v1271_v40, %v922_v18  ;;  %v1699_v6 = vmul.f32 %v922_v18, %v922_v18 }
 0x209   : > { %v3744_v22 = vadd.f32 %v1714_v60, %v1698_v12  ;;  %2052 = vst [vmem:[%s3675_s3 + $0x80] sm:$0xff] %v2545_v37  ;;  %v1716_v42 = vmul.f32 %v1273_v1, %v1273_v1  ;;  %v3749_v32 = vadd.f32 %v1273_v1, %v924_v21  ;;  %v1700_v27 = vmul.f32 %v924_v21, %v924_v21 }
 0x20a   : > { %v2549_v53 = vpack.c.bf16 %v924_v21, %v922_v18  ;;  %2057 = vst [vmem:[%s3675_s3 + $0xa8] sm:$0xff] %v2550_v50  ;;  %v3752_v14 = vadd.f32 %v1715_v15, %v1699_v6 }
 0x20b   : > { %v927_v29 = vpop.f32.mrb[12].mxu0  ;;  %v3755_v28 = vadd.f32 %v1716_v42, %v1700_v27 }
 0x20c   : > { %v928_v0 = vadd.f32 %v927_v29, %v3666_v33  ;;  %v929_v49 = vpop.f32.mrb[13].mxu0  ;;  %2056 = vst [vmem:[%s3675_s3 + $0xa0] sm:$0xff] %v2549_v53 }
 0x20d   : > { %v930_v20 = vadd.f32 %v929_v49, %v3669_v35  ;;  %v931_v43 = vpop.f32.mrb[14].mxu0 }
 0x20e   : > { %v932_v39 = vadd.f32 %v931_v43, %v3666_v33  ;;  %v933_v9 = vpop.f32.mrb[15].mxu0  ;;  %v1701_v52 = vmul.f32 %v928_v0, %v928_v0 }
 0x20f   : > { %v2553_v36 = vpack.c.bf16 %v930_v20, %v928_v0  ;;  %v934_v44 = vadd.f32 %v933_v9, %v3669_v35  ;;  %v1702_v54 = vmul.f32 %v930_v20, %v930_v20 }
 0x210   : > { %v1703_v56 = vmul.f32 %v932_v39, %v932_v39 }
 0x211   : > { %2060 = vst [vmem:[%s3675_s3 + $0xc0] sm:$0xff] %v2553_v36  ;;  %v2557_v23 = vpack.c.bf16 %v934_v44, %v932_v39  ;;  %v1276_v4 = vpop.f32.mrb[12].mxu1  ;;  %v1704_v62 = vmul.f32 %v934_v44, %v934_v44 }
 0x212   : > { %v1277_v55 = vadd.f32 %v1276_v4, %v3666_v33  ;;  %v1278_v57 = vpop.f32.mrb[13].mxu1 }
 0x213   : > { %2064 = vst [vmem:[%s3675_s3 + $0xe0] sm:$0xff] %v2557_v23  ;;  %v1412_v58 = vpop.f32.mrb[16].mxu0  ;;  %v1279_v38 = vadd.f32 %v1278_v57, %v3669_v35  ;;  %v1280_v47 = vpop.f32.mrb[14].mxu1 }
 0x214   : > { %v1413_v63 = vadd.f32 %v1412_v58, %v3666_v33  ;;  %v1414_v3 = vpop.f32.mrb[17].mxu0  ;;  %v3766_v26 = vadd.f32 %v1277_v55, %v928_v0  ;;  %v1717_v40 = vmul.f32 %v1277_v55, %v1277_v55  ;;  %v1281_v11 = vadd.f32 %v1280_v47, %v3666_v33  ;;  %v1282_v60 = vpop.f32.mrb[15].mxu1 }
 0x215   : > { %v1415_v12 = vadd.f32 %v1414_v3, %v3669_v35  ;;  %v1416_v37 = vpop.f32.mrb[18].mxu0  ;;  %v3770_v1 = vadd.f32 %v1279_v38, %v930_v20  ;;  %v1718_v18 = vmul.f32 %v1279_v38, %v1279_v38  ;;  %v2554_v21 = vpack.c.bf16 %v1279_v38, %v1277_v55 }
 0x216   : > { %v1631_v15 = vadd.f32 %v3681_v61, %v1413_v63  ;;  %v1418_v50 = vpop.f32.mrb[19].mxu0  ;;  %v3773_v6 = vadd.f32 %v1717_v40, %v1701_v52  ;;  %v3775_v42 = vadd.f32 %v1281_v11, %v932_v39  ;;  %v1719_v27 = vmul.f32 %v1281_v11, %v1281_v11 }
 0x217   : > { %v1737_v53 = vmul.f32 %v1413_v63, %v1413_v63  ;;  %v3777_v29 = vadd.f32 %v1718_v18, %v1702_v54  ;;  %2061 = vst [vmem:[%s3675_s3 + $0xc8] sm:$0xff] %v2554_v21  ;;  %v1283_v0 = vadd.f32 %v1282_v60, %v3669_v35  ;;  %v1632_v49 = vadd.f32 %v3684_v16, %v1415_v12 }
 0x218   : > { %v1738_v20 = vmul.f32 %v1415_v12, %v1415_v12  ;;  %v3782_v43 = vadd.f32 %v1719_v27, %v1703_v56  ;;  %v2531_v9 = vpack.c.bf16 %v1415_v12, %v1413_v63  ;;  %v1417_v39 = vadd.f32 %v1416_v37, %v3666_v33 }
 0x219   : > { %v1753_v61 = vadd.f32 %v1737_v53, %v3687_v8  ;;  %v3786_v36 = vadd.f32 %v1283_v0, %v934_v44  ;;  %v1720_v23 = vmul.f32 %v1283_v0, %v1283_v0  ;;  %v2558_v4 = vpack.c.bf16 %v1283_v0, %v1281_v11  ;;  %v1576_v54 = vpop.f32.mrb[16].mxu1 }
 0x21a   : > { %v1754_v52 = vadd.f32 %v1738_v20, %v3692_v34  ;;  %2038 = vst [vmem:[%s3675_s3 + $0x10] sm:$0xff] %v2531_v9  ;;  %v1633_v55 = vadd.f32 %v3689_v10, %v1417_v39  ;;  %v1739_v16 = vmul.f32 %v1417_v39, %v1417_v39  ;;  %v1419_v57 = vadd.f32 %v1418_v50, %v3669_v35  ;;  %v1578_v8 = vpop.f32.mrb[17].mxu1 }
 0x21b   : > { %v1577_v58 = vadd.f32 %v1576_v54, %v3666_v33  ;;  %v1422_v56 = vpop.f32.mrb[20].mxu0  ;;  %v3793_v38 = vadd.f32 %v1720_v23, %v1704_v62  ;;  %2065 = vst [vmem:[%s3675_s3 + $0xe8] sm:$0xff] %v2558_v4  ;;  %v1579_v44 = vadd.f32 %v1578_v8, %v3669_v35  ;;  %v1580_v34 = vpop.f32.mrb[18].mxu1 }
 0x21c   : > { %v1423_v47 = vadd.f32 %v1422_v56, %v3666_v33  ;;  %v1424_v63 = vpop.f32.mrb[21].mxu0  ;;  %v1755_v3 = vadd.f32 %v1739_v16, %v3697_v48  ;;  %v1634_v10 = vadd.f32 %v3695_v51, %v1419_v57  ;;  %v1740_v40 = vmul.f32 %v1419_v57, %v1419_v57  ;;  %v1582_v60 = vpop.f32.mrb[19].mxu1 }
 0x21d   : > { %v2535_v11 = vpack.c.bf16 %v1419_v57, %v1417_v39  ;;  %v1426_v12 = vpop.f32.mrb[22].mxu0  ;;  %v1647_v37 = vadd.f32 %v1631_v15, %v1577_v58  ;;  %v1769_v62 = vmul.f32 %v1577_v58, %v1577_v58  ;;  %v1648_v18 = vadd.f32 %v1632_v49, %v1579_v44 }
 0x21e   : > { %v1770_v21 = vmul.f32 %v1579_v44, %v1579_v44  ;;  %v1428_v50 = vpop.f32.mrb[23].mxu0  ;;  %v1756_v27 = vadd.f32 %v1740_v40, %v3701_v19  ;;  %v2532_v53 = vpack.c.bf16 %v1579_v44, %v1577_v58  ;;  %v1635_v0 = vadd.f32 %v3708_v30, %v1423_v47 }
 0x21f   : > { %2042 = vst [vmem:[%s3675_s3 + $0x30] sm:$0xff] %v2535_v11  ;;  %v1741_v20 = vmul.f32 %v1423_v47, %v1423_v47  ;;  %v1785_v48 = vadd.f32 %v1769_v62, %v1753_v61  ;;  %v1581_v51 = vadd.f32 %v1580_v34, %v3666_v33  ;;  %v1425_v39 = vadd.f32 %v1424_v63, %v3669_v35 }
 0x220   : > { %v1786_v9 = vadd.f32 %v1770_v21, %v1754_v52  ;;  %2039 = vst [vmem:[%s3675_s3 + $0x18] sm:$0xff] %v2532_v53  ;;  %v1583_v49 = vadd.f32 %v1582_v60, %v3669_v35  ;;  %v1427_v23 = vadd.f32 %v1426_v12, %v3666_v33  ;;  %v1429_v19 = vadd.f32 %v1428_v50, %v3669_v35 }
 0x221   : > { %v1757_v15 = vadd.f32 %v1741_v20, %v3715_v31  ;;  %v1649_v4 = vadd.f32 %v1633_v55, %v1581_v51  ;;  %v1771_v54 = vmul.f32 %v1581_v51, %v1581_v51  ;;  %v1636_v30 = vadd.f32 %v3712_v59, %v1425_v39  ;;  %v1586_v52 = vpop.f32.mrb[20].mxu1 }
 0x222   : > { %v1742_v61 = vmul.f32 %v1425_v39, %v1425_v39  ;;  %v2539_v16 = vpack.c.bf16 %v1425_v39, %v1423_v47  ;;  %v1650_v57 = vadd.f32 %v1634_v10, %v1583_v49  ;;  %v1772_v58 = vmul.f32 %v1583_v49, %v1583_v49  ;;  %v1588_v56 = vpop.f32.mrb[21].mxu1 }
 0x223   : > { %v2536_v8 = vpack.c.bf16 %v1583_v49, %v1581_v51  ;;  %v1432_v31 = vpop.f32.mrb[24].mxu0  ;;  %v1663_v44 = vadd.f32 %v1649_v4, %v1647_v37  ;;  %v1787_v34 = vadd.f32 %v1771_v54, %v1755_v3  ;;  %v1637_v40 = vadd.f32 %v3717_v41, %v1427_v23  ;;  %v1590_v55 = vpop.f32.mrb[22].mxu1 }
 0x224   : > { %v1758_v63 = vadd.f32 %v1742_v61, %v3719_v24  ;;  %v1434_v11 = vpop.f32.mrb[25].mxu0  ;;  %2046 = vst [vmem:[%s3675_s3 + $0x50] sm:$0xff] %v2539_v16  ;;  %v1676_v60 = vadd.f32 %v1650_v57, %v1648_v18  ;;  %v1788_v59 = vadd.f32 %v1772_v58, %v1756_v27  ;;  %v1743_v12 = vmul.f32 %v1427_v23, %v1427_v23  ;;  %v1592_v10 = vpop.f32.mrb[23].mxu1 }
 0x225   : > { %2043 = vst [vmem:[%s3675_s3 + $0x38] sm:$0xff] %v2536_v8  ;;  %v1638_v47 = vadd.f32 %v3722_v7, %v1429_v19  ;;  %v1436_v62 = vpop.f32.mrb[26].mxu0  ;;  %v1801_v21 = vadd.f32 %v1787_v34, %v1785_v48  ;;  %v1744_v50 = vmul.f32 %v1429_v19, %v1429_v19  ;;  %v2543_v37 = vpack.c.bf16 %v1429_v19, %v1427_v23 }
 0x226   : > { %v1587_v3 = vadd.f32 %v1586_v52, %v3666_v33  ;;  %v1438_v24 = vpop.f32.mrb[27].mxu0  ;;  %v1814_v53 = vadd.f32 %v1788_v59, %v1786_v9  ;;  %v1759_v41 = vadd.f32 %v1743_v12, %v3724_v45  ;;  %v1589_v20 = vadd.f32 %v1588_v56, %v3669_v35 }
 0x227   : > { %v1433_v18 = vadd.f32 %v1432_v31, %v3666_v33  ;;  %v1760_v27 = vadd.f32 %v1744_v50, %v3726_v46  ;;  %2050 = vst [vmem:[%s3675_s3 + $0x70] sm:$0xff] %v2543_v37  ;;  %v1591_v48 = vadd.f32 %v1590_v55, %v3666_v33  ;;  %v1435_v57 = vadd.f32 %v1434_v11, %v3669_v35 }
 0x228   : > { %v1651_v7 = vadd.f32 %v1635_v0, %v1587_v3  ;;  %v1773_v51 = vmul.f32 %v1587_v3, %v1587_v3  ;;  %v1652_v39 = vadd.f32 %v1636_v30, %v1589_v20  ;;  %v1774_v49 = vmul.f32 %v1589_v20, %v1589_v20 }
 0x229   : > { %v2540_v23 = vpack.c.bf16 %v1589_v20, %v1587_v3  ;;  %v1639_v19 = vadd.f32 %v3733_v5, %v1433_v18  ;;  %v1745_v45 = vmul.f32 %v1433_v18, %v1433_v18  ;;  %v1653_v54 = vadd.f32 %v1637_v40, %v1591_v48  ;;  %v1596_v61 = vpop.f32.mrb[24].mxu1 }
 0x22a   : > { %v1664_v9 = vadd.f32 %v1663_v44, %v1651_v7  ;;  %v1789_v4 = vadd.f32 %v1773_v51, %v1757_v15  ;;  %v1677_v52 = vadd.f32 %v1676_v60, %v1652_v39  ;;  %v1790_v16 = vadd.f32 %v1774_v49, %v1758_v63  ;;  %v1598_v0 = vpop.f32.mrb[25].mxu1 }
 0x22b   : > { %2047 = vst [vmem:[%s3675_s3 + $0x58] sm:$0xff] %v2540_v23  ;;  %v1775_v46 = vmul.f32 %v1591_v48, %v1591_v48  ;;  %v1442_v58 = vpop.f32.mrb[28].mxu0  ;;  %v1761_v30 = vadd.f32 %v1745_v45, %v3739_v25  ;;  %v1593_v31 = vadd.f32 %v1592_v10, %v3669_v35  ;;  %v1600_v5 = vpop.f32.mrb[26].mxu1  ;;  %v1640_v40 = vadd.f32 %v3736_v13, %v1435_v57 }
 0x22c   : > { %v1802_v8 = vadd.f32 %v1801_v21, %v1789_v4  ;;  %v1665_v56 = vadd.f32 %v1664_v9, %v1653_v54  ;;  %v1444_v44 = vpop.f32.mrb[29].mxu0  ;;  %v1815_v15 = vadd.f32 %v1814_v53, %v1790_v16  ;;  %v1746_v63 = vmul.f32 %v1435_v57, %v1435_v57  ;;  %v1602_v55 = vpop.f32.mrb[27].mxu1 }
 0x22d   : > { %v1791_v34 = vadd.f32 %v1775_v46, %v1759_v41  ;;  %v1446_v60 = vpop.f32.mrb[30].mxu0  ;;  %v2547_v11 = vpack.c.bf16 %v1435_v57, %v1433_v18  ;;  %v1654_v59 = vadd.f32 %v1638_v47, %v1593_v31  ;;  %v1776_v12 = vmul.f32 %v1593_v31, %v1593_v31 }
 0x22e   : > { %v2544_v21 = vpack.c.bf16 %v1593_v31, %v1591_v48  ;;  %v1448_v50 = vpop.f32.mrb[31].mxu0  ;;  %v1762_v37 = vadd.f32 %v1746_v63, %v3744_v22  ;;  %v1437_v10 = vadd.f32 %v1436_v62, %v3666_v33  ;;  %v1439_v3 = vadd.f32 %v1438_v24, %v3669_v35 }
 0x22f   : > { %v1803_v25 = vadd.f32 %v1802_v8, %v1791_v34  ;;  %2054 = vst [vmem:[%s3675_s3 + $0x90] sm:$0xff] %v2547_v11  ;;  %v1678_v53 = vadd.f32 %v1677_v52, %v1654_v59  ;;  %v1792_v41 = vadd.f32 %v1776_v12, %v1760_v27  ;;  %v1597_v13 = vadd.f32 %v1596_v61, %v3666_v33 }
 0x230   : > { %2051 = vst [vmem:[%s3675_s3 + $0x78] sm:$0xff] %v2544_v21  ;;  %v1599_v20 = vadd.f32 %v1598_v0, %v3669_v35  ;;  %v1641_v47 = vadd.f32 %v3747_v2, %v1437_v10  ;;  %v1747_v18 = vmul.f32 %v1437_v10, %v1437_v10  ;;  %v1642_v7 = vadd.f32 %v3749_v32, %v1439_v3 }
 0x231   : > { %v1748_v51 = vmul.f32 %v1439_v3, %v1439_v3  ;;  %v1816_v22 = vadd.f32 %v1815_v15, %v1792_v41  ;;  %v2551_v48 = vpack.c.bf16 %v1439_v3, %v1437_v10  ;;  %v1655_v62 = vadd.f32 %v1639_v19, %v1597_v13  ;;  %v1606_v24 = vpop.f32.mrb[28].mxu1 }
 0x232   : > { %v1777_v39 = vmul.f32 %v1597_v13, %v1597_v13  ;;  %v1763_v49 = vadd.f32 %v1747_v18, %v3752_v14  ;;  %v1656_v23 = vadd.f32 %v1640_v40, %v1599_v20  ;;  %v1778_v9 = vmul.f32 %v1599_v20, %v1599_v20  ;;  %v1608_v4 = vpop.f32.mrb[29].mxu1 }
 0x233   : > { %v1764_v27 = vadd.f32 %v1748_v51, %v3755_v28  ;;  %2058 = vst [vmem:[%s3675_s3 + $0xb0] sm:$0xff] %v2551_v48  ;;  %v1666_v45 = vadd.f32 %v1665_v56, %v1655_v62  ;;  %v2548_v54 = vpack.c.bf16 %v1599_v20, %v1597_v13  ;;  %v1443_v32 = vadd.f32 %v1442_v58, %v3666_v33  ;;  %v1610_v61 = vpop.f32.mrb[30].mxu1 }
 0x234   : > { %v1793_v2 = vadd.f32 %v1777_v39, %v1761_v30  ;;  %v1679_v52 = vadd.f32 %v1678_v53, %v1656_v23  ;;  %v1794_v16 = vadd.f32 %v1778_v9, %v1762_v37  ;;  %v1601_v19 = vadd.f32 %v1600_v5, %v3666_v33  ;;  %v1612_v14 = vpop.f32.mrb[31].mxu1 }
 0x235   : > { %v1445_v46 = vadd.f32 %v1444_v44, %v3669_v35  ;;  %2055 = vst [vmem:[%s3675_s3 + $0x98] sm:$0xff] %v2548_v54  ;;  %v1643_v28 = vadd.f32 %v3766_v26, %v1443_v32  ;;  %v1749_v0 = vmul.f32 %v1443_v32, %v1443_v32  ;;  %v1603_v8 = vadd.f32 %v1602_v55, %v3669_v35 }
 0x236   : > { %v1804_v57 = vadd.f32 %v1803_v25, %v1793_v2  ;;  %v1817_v30 = vadd.f32 %v1816_v22, %v1794_v16  ;;  %v1657_v56 = vadd.f32 %v1641_v47, %v1601_v19  ;;  %v1779_v31 = vmul.f32 %v1601_v19, %v1601_v19 }
 0x237   : > { %v1644_v58 = vadd.f32 %v3770_v1, %v1445_v46  ;;  %v1765_v15 = vadd.f32 %v1749_v0, %v3773_v6  ;;  %v1750_v5 = vmul.f32 %v1445_v46, %v1445_v46  ;;  %v2555_v34 = vpack.c.bf16 %v1445_v46, %v1443_v32 }
 0x238   : > { %v1658_v44 = vadd.f32 %v1642_v7, %v1603_v8  ;;  %v1667_v40 = vadd.f32 %v1666_v45, %v1657_v56  ;;  %v1795_v63 = vadd.f32 %v1779_v31, %v1763_v49  ;;  %v1780_v11 = vmul.f32 %v1603_v8, %v1603_v8 }
 0x239   : > { %v2552_v59 = vpack.c.bf16 %v1603_v8, %v1601_v19  ;;  %v1766_v26 = vadd.f32 %v1750_v5, %v3777_v29  ;;  %2062 = vst [vmem:[%s3675_s3 + $0xd0] sm:$0xff] %v2555_v34  ;;  %v1447_v55 = vadd.f32 %v1446_v60, %v3666_v33  ;;  %v1449_v21 = vadd.f32 %v1448_v50, %v3669_v35 }
 0x23a   : > { %v1680_v12 = vadd.f32 %v1679_v52, %v1658_v44  ;;  %v1805_v25 = vadd.f32 %v1804_v57, %v1795_v63  ;;  %v1796_v1 = vadd.f32 %v1780_v11, %v1764_v27  ;;  %v1607_v6 = vadd.f32 %v1606_v24, %v3666_v33 }
 0x23b   : > { %2059 = vst [vmem:[%s3675_s3 + $0xb8] sm:$0xff] %v2552_v59  ;;  %v1609_v37 = vadd.f32 %v1608_v4, %v3669_v35  ;;  %v1645_v10 = vadd.f32 %v3775_v42, %v1447_v55  ;;  %v1751_v3 = vmul.f32 %v1447_v55, %v1447_v55  ;;  %v1646_v53 = vadd.f32 %v3786_v36, %v1449_v21 }
 0x23c   : > { %v1752_v29 = vmul.f32 %v1449_v21, %v1449_v21  ;;  %v1818_v41 = vadd.f32 %v1817_v30, %v1796_v1  ;;  %v2559_v13 = vpack.c.bf16 %v1449_v21, %v1447_v55  ;;  %v1659_v60 = vadd.f32 %v1643_v28, %v1607_v6 }
 0x23d   : > { %v1781_v20 = vmul.f32 %v1607_v6, %v1607_v6  ;;  %v1767_v50 = vadd.f32 %v1751_v3, %v3782_v43  ;;  %v1660_v18 = vadd.f32 %v1644_v58, %v1609_v37  ;;  %v1782_v7 = vmul.f32 %v1609_v37, %v1609_v37 }
 0x23e   : > { %v1768_v47 = vadd.f32 %v1752_v29, %v3793_v38  ;;  %2066 = vst [vmem:[%s3675_s3 + $0xf0] sm:$0xff] %v2559_v13  ;;  %v1668_v51 = vadd.f32 %v1667_v40, %v1659_v60  ;;  %v2556_v48 = vpack.c.bf16 %v1609_v37, %v1607_v6  ;;  %v1611_v42 = vadd.f32 %v1610_v61, %v3666_v33  ;;  %v2106_v29 = vld [vmem:[%s3675_s3 + $0x8] sm:$0xff] (%p4028_p10)  ;;  %v2110_v13 = vld [vmem:[%s3675_s3 + $0x18] sm:$0xff] (%p4028_p10)  ;;  %v2112_v60 = vld [vmem:[%s3675_s3 + $0x20] sm:$0xff] (%p4028_p10) }
 0x23f   : > { %v1797_v22 = vadd.f32 %v1781_v20, %v1765_v15  ;;  %v1681_v36 = vadd.f32 %v1680_v12, %v1660_v18  ;;  %v1798_v62 = vadd.f32 %v1782_v7, %v1766_v26  ;;  %v1613_v39 = vadd.f32 %v1612_v14, %v3669_v35  ;;  %v2114_v20 = vld [vmem:[%s3675_s3 + $0x28] sm:$0xff] (%p4028_p10)  ;;  %v2120_v18 = vld [vmem:[%s3675_s3 + $0x40] sm:$0xff] (%p4028_p10)  ;;  %2107 = vst [vmem:[%s3884_s25 + $0x8] sm:$0xff] (%p4028_p10), %v2106_v29 }
 0x240   : > { %2063 = vst [vmem:[%s3675_s3 + $0xd8] sm:$0xff] %v2556_v48  ;;  %v1661_v49 = vadd.f32 %v1645_v10, %v1611_v42  ;;  %v1783_v27 = vmul.f32 %v1611_v42, %v1611_v42  ;;  %v2935_v56 = vmov 1983009808   ;;  %v1827_v10 = vld [vmem:[%s3656_s20] sm:$0xf]  ;;  %v2122_v7 = vld [vmem:[%s3675_s3 + $0x48] sm:$0xff] (%p4028_p10) }
 0x241   : > { %v1806_v24 = vadd.f32 %v1805_v25, %v1797_v22  ;;  %v1819_v43 = vadd.f32 %v1818_v41, %v1798_v62  ;;  %v1662_v23 = vadd.f32 %v1646_v53, %v1613_v39  ;;  %v1784_v38 = vmul.f32 %v1613_v39, %v1613_v39  ;;  %v2108_v41 = vld [vmem:[%s3675_s3 + $0x10] sm:$0xff] (%p4028_p10)  ;;  %v2126_v22 = vld [vmem:[%s3675_s3 + $0x58] sm:$0xff] (%p4028_p10)  ;;  %2111 = vst [vmem:[%s3884_s25 + $0x28] sm:$0xff] (%p4028_p10), %v2110_v13  ;;  %v2128_v48 = vld [vmem:[%s3675_s3 + $0x60] sm:$0xff] (%p4028_p10) }
 0x242   : > { %v2560_v9 = vpack.c.bf16 %v1613_v39, %v1611_v42  ;;  %v1669_v4 = vadd.f32 %v1668_v51, %v1661_v49  ;;  %v1799_v45 = vadd.f32 %v1783_v27, %v1767_v50  ;;  %v1835_v31 = vunpack.c.l.s4 %v2935_v56  ;;  %v2116_v50 = vld [vmem:[%s3675_s3 + $0x30] sm:$0xff] (%p4028_p10)  ;;  %2109 = vst [vmem:[%s3884_s25 + $0x20] sm:$0xff] (%p4028_p10), %v2108_v41  ;;  %2113 = vst [vmem:[%s3884_s25 + $0x40] sm:$0xff] (%p4028_p10), %v2112_v60  ;;  %v2130_v42 = vld [vmem:[%s3675_s3 + $0x68] sm:$0xff] (%p4028_p10) }
 0x243   : > { %v1682_v2 = vadd.f32 %v1681_v36, %v1662_v23  ;;  %v1800_v54 = vadd.f32 %v1784_v38, %v1768_v47  ;;  %v2118_v47 = vld [vmem:[%s3675_s3 + $0x38] sm:$0xff] (%p4028_p10)  ;;  %v2124_v51 = vld [vmem:[%s3675_s3 + $0x50] sm:$0xff] (%p4028_p10)  ;;  %2115 = vst [vmem:[%s3884_s25 + $0x48] sm:$0xff] (%p4028_p10), %v2114_v20  ;;  %2117 = vst [vmem:[%s3884_s25 + $0x60] sm:$0xff] (%p4028_p10), %v2116_v50 }
 0x244   : > { %2067 = vst [vmem:[%s3675_s3 + $0xf8] sm:$0xff] %v2560_v9  ;;  %v1670_v32 = vrot.slane %v1669_v4, 4  ;;  %v1807_v33 = vadd.f32 %v1806_v24, %v1799_v45  ;;  %v1836_v11 = vunpack.c.0.s8 %v1835_v31  ;;  %2119 = vst [vmem:[%s3884_s25 + $0x68] sm:$0xff] (%p4028_p10), %v2118_v47  ;;  %v2132_v36 = vld [vmem:[%s3675_s3 + $0x70] sm:$0xff] (%p4028_p10)  ;;  %v2134_v62 = vld [vmem:[%s3675_s3 + $0x78] sm:$0xff] (%p4028_p10) }
 0x245   : > { %v1683_v61 = vrot.slane %v1682_v2, 4  ;;  %v1820_v52 = vadd.f32 %v1819_v43, %v1800_v54  ;;  %2121 = vst [vmem:[%s3884_s25 + $0x80] sm:$0xff] (%p4028_p10), %v2120_v18  ;;  %2123 = vst [vmem:[%s3884_s25 + $0x88] sm:$0xff] (%p4028_p10), %v2122_v7  ;;  %v2136_v39 = vld [vmem:[%s3675_s3 + $0x80] sm:$0xff] (%p4028_p10)  ;;  %v2138_v24 = vld [vmem:[%s3675_s3 + $0x88] sm:$0xff] (%p4028_p10) }
 0x246   : > { %v1671_v16 = vadd.f32 %v1670_v32, %v1669_v4  ;;  %v1808_v19 = vrot.slane %v1807_v33, 4  ;;  %v1839_v1 = vsub.s32 %v1836_v11, %v3659_v17  ;;  %v2104_v17 = vld [vmem:[%s3675_s3] sm:$0xff] (%p4028_p10)  ;;  %2125 = vst [vmem:[%s3884_s25 + $0xa0] sm:$0xff] (%p4028_p10), %v2124_v51  ;;  %2127 = vst [vmem:[%s3884_s25 + $0xa8] sm:$0xff] (%p4028_p10), %v2126_v22  ;;  %v2140_v49 = vld [vmem:[%s3675_s3 + $0x90] sm:$0xff] (%p4028_p10) }
 0x247   : > { %v1684_v35 = vadd.f32 %v1683_v61, %v1682_v2  ;;  %v1821_v46 = vrot.slane %v1820_v52, 4  ;;  %2105 = vst [vmem:[%s3884_s25] sm:$0xff] (%p4028_p10), %v2104_v17  ;;  %2129 = vst [vmem:[%s3884_s25 + $0xc0] sm:$0xff] (%p4028_p10), %v2128_v48  ;;  %v2142_v27 = vld [vmem:[%s3675_s3 + $0x98] sm:$0xff] (%p4028_p10)  ;;  %v2144_v43 = vld [vmem:[%s3675_s3 + $0xa0] sm:$0xff] (%p4028_p10) }
 0x248   : > { %v1672_v14 = vrot.slane %v1671_v16, 2  ;;  %v1809_v57 = vadd.f32 %v1808_v19, %v1807_v33  ;;  %2131 = vst [vmem:[%s3884_s25 + $0xc8] sm:$0xff] (%p4028_p10), %v2130_v42  ;;  %2133 = vst [vmem:[%s3884_s25 + $0xe0] sm:$0xff] (%p4028_p10), %v2132_v36  ;;  %v2146_v23 = vld [vmem:[%s3675_s3 + $0xa8] sm:$0xff] (%p4028_p10)  ;;  %v2148_v38 = vld [vmem:[%s3675_s3 + $0xb0] sm:$0xff] (%p4028_p10) }
 0x249   : > { %v1685_v28 = vrot.slane %v1684_v35, 2  ;;  %v1822_v0 = vadd.f32 %v1821_v46, %v1820_v52  ;;  %2135 = vst [vmem:[%s3884_s25 + $0xe8] sm:$0xff] (%p4028_p10), %v2134_v62  ;;  %2137 = vst [vmem:[%s3884_s25 + $0x100] sm:$0xff] (%p4028_p10), %v2136_v39  ;;  %v2150_v9 = vld [vmem:[%s3675_s3 + $0xb8] sm:$0xff] (%p4028_p10)  ;;  %v2152_v4 = vld [vmem:[%s3675_s3 + $0xc0] sm:$0xff] (%p4028_p10) }
 0x24a   : > { %v1673_v8 = vadd.f32 %v1672_v14, %v1671_v16  ;;  %v1810_v30 = vrot.slane %v1809_v57, 2  ;;  %2139 = vst [vmem:[%s3884_s25 + $0x108] sm:$0xff] (%p4028_p10), %v2138_v24  ;;  %2141 = vst [vmem:[%s3884_s25 + $0x120] sm:$0xff] (%p4028_p10), %v2140_v49  ;;  %v2154_v45 = vld [vmem:[%s3675_s3 + $0xc8] sm:$0xff] (%p4028_p10)  ;;  %v2156_v2 = vld [vmem:[%s3675_s3 + $0xd0] sm:$0xff] (%p4028_p10) }
 0x24b   : > { %v1686_v58 = vadd.f32 %v1685_v28, %v1684_v35  ;;  %v1823_v15 = vrot.slane %v1822_v0, 2  ;;  %2143 = vst [vmem:[%s3884_s25 + $0x128] sm:$0xff] (%p4028_p10), %v2142_v27  ;;  %2145 = vst [vmem:[%s3884_s25 + $0x140] sm:$0xff] (%p4028_p10), %v2144_v43  ;;  %v2158_v54 = vld [vmem:[%s3675_s3 + $0xd8] sm:$0xff] (%p4028_p10)  ;;  %v2160_v32 = vld [vmem:[%s3675_s3 + $0xe0] sm:$0xff] (%p4028_p10) }
 0x24c   : > { %v1674_v5 = vrot.slane %v1673_v8, 1  ;;  %v1811_v34 = vadd.f32 %v1810_v30, %v1809_v57  ;;  %2147 = vst [vmem:[%s3884_s25 + $0x148] sm:$0xff] (%p4028_p10), %v2146_v23  ;;  %2149 = vst [vmem:[%s3884_s25 + $0x160] sm:$0xff] (%p4028_p10), %v2148_v38  ;;  %v2162_v33 = vld [vmem:[%s3675_s3 + $0xe8] sm:$0xff] (%p4028_p10)  ;;  %v2164_v61 = vld [vmem:[%s3675_s3 + $0xf0] sm:$0xff] (%p4028_p10) }
 0x24d   : > { %v1687_v44 = vrot.slane %v1686_v58, 1  ;;  %v1824_v40 = vadd.f32 %v1823_v15, %v1822_v0  ;;  %2151 = vst [vmem:[%s3884_s25 + $0x168] sm:$0xff] (%p4028_p10), %v2150_v9  ;;  %2153 = vst [vmem:[%s3884_s25 + $0x180] sm:$0xff] (%p4028_p10), %v2152_v4  ;;  %v2166_v52 = vld [vmem:[%s3675_s3 + $0xf8] sm:$0xff] (%p4028_p10) }
 0x24e   : > { %v1812_v63 = vrot.slane %v1811_v34, 1  ;;  %v1675_v26 = vadd.f32 %v1674_v5, %v1673_v8  ;;  %2155 = vst [vmem:[%s3884_s25 + $0x188] sm:$0xff] (%p4028_p10), %v2154_v45  ;;  %2157 = vst [vmem:[%s3884_s25 + $0x1a0] sm:$0xff] (%p4028_p10), %v2156_v2 }
 0x24f   : > { %v1825_v59 = vrot.slane %v1824_v40, 1  ;;  %v1688_v55 = vadd.f32 %v1687_v44, %v1686_v58  ;;  %2159 = vst [vmem:[%s3884_s25 + $0x1a8] sm:$0xff] (%p4028_p10), %v2158_v54  ;;  %2161 = vst [vmem:[%s3884_s25 + $0x1c0] sm:$0xff] (%p4028_p10), %v2160_v32 }
 0x250   : > { %v1813_v12 = vadd.f32 %v1812_v63, %v1811_v34  ;;  %2163 = vst [vmem:[%s3884_s25 + $0x1c8] sm:$0xff] (%p4028_p10), %v2162_v33  ;;  %2165 = vst [vmem:[%s3884_s25 + $0x1e0] sm:$0xff] (%p4028_p10), %v2164_v61 }
 0x251   : > { %v1826_v21 = vadd.f32 %v1825_v59, %v1824_v40  ;;  %2167 = vst [vmem:[%s3884_s25 + $0x1e8] sm:$0xff] (%p4028_p10), %v2166_v52 }
 0x252   : > { %v1829_v25 = vsel %vm1828_vm13, %v1675_v26, %v1813_v12 }
 0x253   : > { %v1830_v6 = vsel %vm1828_vm13, %v1688_v55, %v1826_v21 }
 0x254   : > { %v1833_v37 = vcombine.low %v1829_v25, %v1830_v6  ;;  %2083 = sbr.rel (!%p4028_p10) target bundleno = 603 (0x25b), region = 48 }
 0x256   : > { %v1840_v3 = vrot.slane %v1833_v37, %v1839_v1 }
 0x258   : > { %v1842_v53 = vadd.f32 %v1840_v3, %v1827_v10 }
 0x25a   : > { %1843 = vst [vmem:[%s3656_s20] sm:$0xf] %v1842_v53 }
 0x25b PF: > { %s21_s27 = sadd.s32 1, %s2923_s27   ;;  %s4031_s24 = sld [smem:[#allocation13_spill]] }
 0x25c   : > { %p3942_p12 = scmp.ge.s32.totalorder %s21_s27, 6   ;;  %s4032_s7 = sld [smem:[#allocation10_spill]] }
 0x25d   : > { %s4033_s25 = sld [smem:[#allocation11_spill]]  ;;  %s4034_s8 = sld [smem:[#allocation12_spill]] }
 0x25e   : > { %s4036_s15 = smov %s2879_s16  ;;  %s4037_s16 = smov %s3068_s14 }
 0x25f   : > { %s4038_s17 = smov %s2887_s18  ;;  %s4039_s18 = smov %s2891_s19 }
 0x260   : > { %s4040_s19 = smov %s3133_s30  ;;  %s4041_s20 = smov %s2899_s21 }
 0x261   : > { %s4042_s21 = smov %s2903_s22  ;;  %s4043_s22 = smov %s4031_s24 }
 0x262   : > { %s4044_s23 = smov %s4032_s7  ;;  %s4045_s24 = smov %s2919_s26 }
 0x263   : > { %s4046_s26 = smov %s4034_s8  ;;  %20 = sbr.rel (!%p3942_p12) target bundleno = 13 (0xd), region = 132 }
 0x26a   :  { %2198 = vsyncpa [#allocation4], 1 }
 0x26b   :  { %2200 = vsyncpa [#allocation4 + $0x1], 1 }
 0x26c   :  { %2201 = vsyncpa [#allocation6], 1 }
 0x26d   :  { %2203 = vsyncpa [#allocation6 + $0x1], 1 }

</bundles_post_ra>
